<compile_context>
chip_gen: v7x
topology: tpu7x:2x2x1
jax: 0.10.0
libtpu: 0.0.40
codegen_flags: <defaults>
</compile_context>

<pallas_src>
import functools

import jax
import jax.numpy as jnp
import numpy as np
from jax import lax
from jax.experimental import pallas as pl
from jax.experimental.pallas import tpu as pltpu


def lstm_recurrent_kernel(gx_ref, whh_ref, h_out_ref, h_ref, c_ref, *, t_chunk, hidden):
    """One grid step == one (batch block, time chunk). Runs t_chunk LSTM steps in-kernel.

    gx_ref   : (t_chunk, B_blk, 4H)  precomputed input-side gate pre-activations (+bias)
    whh_ref  : (H, 4H)               recurrent weights, transposed for h @ W
    h_out_ref: (B_blk, H)            last hidden state (revisited output block over time)
    h_ref, c_ref: (B_blk, H)         VMEM scratch carrying the recurrence across chunks
    """
    t_blk = pl.program_id(1)

    @pl.when(t_blk == 0)
    def _init():
        h_ref[...] = jnp.zeros_like(h_ref)
        c_ref[...] = jnp.zeros_like(c_ref)

    # Grid-invariant recurrent weights: load once per kernel invocation.
    w_hh = whh_ref[...]  # (H, 4H)

    def step(s, carry):
        del carry
        # One fused (B_blk, H) @ (H, 4H) MXU matmul per LSTM step; bias and the
        # input-side projection were hoisted to the wrapper.
        pre = gx_ref[s] + jnp.dot(h_ref[...], w_hh,
                                  preferred_element_type=jnp.float32)

        # PyTorch gate order i, f, g, o; slices are lane-aligned when H % 128 == 0.
        i_gate = jax.nn.sigmoid(pre[:, 0 * hidden:1 * hidden])
        f_gate = jax.nn.sigmoid(pre[:, 1 * hidden:2 * hidden])
        g_gate = jnp.tanh(pre[:, 2 * hidden:3 * hidden])
        o_gate = jax.nn.sigmoid(pre[:, 3 * hidden:4 * hidden])

        c_new = f_gate * c_ref[...] + i_gate * g_gate
        h_new = o_gate * jnp.tanh(c_new)
        c_ref[...] = c_new
        h_ref[...] = h_new
        return 0

    lax.fori_loop(0, t_chunk, step, 0, unroll=True)

    # Output block index depends only on the batch-block axis -> revisited (resident)
    # output block; the final writeback carries the last time chunk's value.
    h_out_ref[...] = h_ref[...]


def regression_lstm_forward(x, params, *, b_block=None, t_chunk=None):
    """x: (B, T, F) float32, batch_first (PyTorch convention). Returns (B * out_features,)."""
    B, T, F = x.shape
    H = params["weight_hh"].shape[1]

    b_block = B if b_block is None else b_block
    t_chunk = T if t_chunk is None else t_chunk
    assert B % b_block == 0 and T % t_chunk == 0, "block sizes must divide B and T"
    nb = B // b_block
    nt = T // t_chunk

    # --- Hoisted input projection (one big matmul over all (b, t) pairs) -------------
    # weight_ih: (4H, F); biases folded in once. Result is time-major (T, B, 4H) with
    # contiguous gate blocks [i | f | g | o] along the lane axis.
    bias = params["bias_ih"] + params["bias_hh"]                       # (4H,)
    gates_x = jnp.einsum("btf,gf->tbg", x, params["weight_ih"]) + bias  # (T, B, 4H)

    # Recurrent weights transposed for h @ W : (H, 4H).
    whh_t = params["weight_hh"].T

    kernel = functools.partial(lstm_recurrent_kernel, t_chunk=t_chunk, hidden=H)

    h_last = pl.pallas_call(
        kernel,
        out_shape=jax.ShapeDtypeStruct((B, H), jnp.float32),
        grid_spec=pltpu.PrefetchScalarGridSpec(
            num_scalar_prefetch=0,
            grid=(nb, nt),
            in_specs=[
                # Streamed time chunks of precomputed input-side gates.
                pl.BlockSpec((t_chunk, b_block, 4 * H), lambda b, t: (t, b, 0)),
                # Grid-invariant recurrent weights (constant index_map -> fetched once).
                pl.BlockSpec((H, 4 * H), lambda b, t: (0, 0)),
            ],
            out_specs=pl.BlockSpec((b_block, H), lambda b, t: (b, 0)),
            scratch_shapes=[
                pltpu.VMEM((b_block, H), jnp.float32),  # h state
                pltpu.VMEM((b_block, H), jnp.float32),  # c state
            ],
        ),
        compiler_params=pltpu.CompilerParams(
            # Batch blocks are independent (megacore-parallel); time is a sequential
            # recurrence carried in VMEM scratch.
            dimension_semantics=("parallel", "arbitrary"),
        ),
    )(gates_x, whh_t)

    # Tiny final Linear (out_features=4) in the wrapper: avoids a masked sub-128-lane
    # store inside the kernel and removes W_o/b_o from kernel VMEM.
    out = h_last @ params["linear_w"].T + params["linear_b"]
    return out.reshape(-1)  # .flatten() as in the PyTorch module


def reference_forward(x, params):
    """Pure-JAX reference of the PyTorch forward (for correctness check)."""
    B, T, F = x.shape
    H = params["weight_hh"].shape[1]
    h = jnp.zeros((B, H), jnp.float32)
    c = jnp.zeros((B, H), jnp.float32)
    wih_t = params["weight_ih"].T
    whh_t = params["weight_hh"].T
    b = params["bias_ih"] + params["bias_hh"]
    for t in range(T):
        gates = x[:, t, :] @ wih_t + h @ whh_t + b
        i = jax.nn.sigmoid(gates[:, 0 * H:1 * H])
        f = jax.nn.sigmoid(gates[:, 1 * H:2 * H])
        g = jnp.tanh(gates[:, 2 * H:3 * H])
        o = jax.nn.sigmoid(gates[:, 3 * H:4 * H])
        c = f * c + i * g
        h = o * jnp.tanh(c)
    out = h @ params["linear_w"].T + params["linear_b"]
    return out.reshape(-1)


def init_params(key, num_features, hidden_units, out_features):
    """Deterministic synthetic parameters with PyTorch nn.LSTM / nn.Linear shapes."""
    ks = jax.random.split(key, 6)
    scale = 1.0 / np.sqrt(hidden_units)
    return {
        "weight_ih": jax.random.uniform(ks[0], (4 * hidden_units, num_features),
                                        jnp.float32, -scale, scale),
        "weight_hh": jax.random.uniform(ks[1], (4 * hidden_units, hidden_units),
                                        jnp.float32, -scale, scale),
        "bias_ih": jax.random.uniform(ks[2], (4 * hidden_units,),
                                      jnp.float32, -scale, scale),
        "bias_hh": jax.random.uniform(ks[3], (4 * hidden_units,),
                                      jnp.float32, -scale, scale),
        "linear_w": jax.random.uniform(ks[4], (out_features, hidden_units),
                                       jnp.float32, -scale, scale),
        "linear_b": jax.random.uniform(ks[5], (out_features,),
                                       jnp.float32, -scale, scale),
    }


if __name__ == "__main__":
    # Shapes consistent with the module spec: num_features=5, seq_len=4,
    # step_len(out_features)=4, hidden_units=256 (spec value, lane-aligned);
    # batch shrunk 256 -> 16. Two batch blocks + two time chunks exercise both
    # grid axes and the VMEM-carried recurrence.
    batch, seq_len, num_features = 16, 4, 5
    hidden_units, out_features = 256, 4

    key = jax.random.PRNGKey(0)
    k_x, k_p = jax.random.split(key)
    x = jax.random.normal(k_x, (batch, seq_len, num_features), jnp.float32)
    params = init_params(k_p, num_features, hidden_units, out_features)

    out = regression_lstm_forward(x, params, b_block=8, t_chunk=2)
    out = jax.block_until_ready(out)

    ref = reference_forward(x, params)
    assert out.shape == (batch * out_features,), out.shape
    np.testing.assert_allclose(np.asarray(out), np.asarray(ref), rtol=1e-5, atol=1e-5)

    print("KERNEL_OK")
</pallas_src>

<mosaic_0001>
module attributes {stable_mosaic.version = 11 : i64} {
  func.func @lstm_recurrent_kernel(%arg0: i32, %arg1: i32, %arg2: memref<2x8x1024xf32, #tpu.memory_space<vmem>>, %arg3: memref<256x1024xf32, #tpu.memory_space<vmem>>, %arg4: memref<8x256xf32, #tpu.memory_space<vmem>>, %arg5: memref<8x256xf32, #tpu.memory_space<vmem>>, %arg6: memref<8x256xf32, #tpu.memory_space<vmem>>) attributes {dimension_semantics = [#tpu.dimension_semantics<parallel>, #tpu.dimension_semantics<arbitrary>], iteration_bounds = array<i64: 2, 2>, scalar_prefetch = 0 : i64, scratch_operands = 2 : i64, tpu.core_type = #tpu.core_type<tc>, window_params = [{transform_indices = @transform_0, window_bounds = array<i64: 2, 8, 1024>}, {pipeline_mode = #tpu.pipeline_mode<synchronous>, transform_indices = @transform_1, window_bounds = array<i64: 256, 1024>}, {transform_indices = @transform_2, window_bounds = array<i64: 8, 256>}]} {
    %c0_i32 = arith.constant 0 : i32
    %0 = arith.cmpi eq, %arg1, %c0_i32 : i32
    %1 = arith.extui %0 : i1 to i32
    %c0_i32_0 = arith.constant 0 : i32
    %2 = arith.cmpi ne, %1, %c0_i32_0 : i32
    scf.if %2 {
      %cst_34 = arith.constant 0.000000e+00 : f32
      %74 = vector.broadcast %cst_34 : f32 to vector<8x256xf32>
      %c0_35 = arith.constant 0 : index
      %c0_36 = arith.constant 0 : index
      %75 = vector.load %arg5[%c0_35, %c0_36] : memref<8x256xf32, #tpu.memory_space<vmem>>, vector<8x256xf32>
      tpu.vector_store %arg5[%c0_35, %c0_36], %74 {strides = array<i32>} : memref<8x256xf32, #tpu.memory_space<vmem>>, vector<8x256xf32>,
      %cst_37 = arith.constant 0.000000e+00 : f32
      %76 = vector.broadcast %cst_37 : f32 to vector<8x256xf32>
      %c0_38 = arith.constant 0 : index
      %c0_39 = arith.constant 0 : index
      %77 = vector.load %arg6[%c0_38, %c0_39] : memref<8x256xf32, #tpu.memory_space<vmem>>, vector<8x256xf32>
      tpu.vector_store %arg6[%c0_38, %c0_39], %76 {strides = array<i32>} : memref<8x256xf32, #tpu.memory_space<vmem>>, vector<8x256xf32>,
    } else {
    }
    %c0 = arith.constant 0 : index
    %c0_1 = arith.constant 0 : index
    %3 = vector.load %arg3[%c0, %c0_1] : memref<256x1024xf32, #tpu.memory_space<vmem>>, vector<256x1024xf32>
    %c0_i32_2 = arith.constant 0 : i32
    %4 = arith.index_cast %c0_i32_2 : i32 to index
    %c0_3 = arith.constant 0 : index
    %c0_4 = arith.constant 0 : index
    %5 = vector.load %arg2[%4, %c0_3, %c0_4] : memref<2x8x1024xf32, #tpu.memory_space<vmem>>, vector<1x8x1024xf32>
    %6 = vector.shape_cast %5 : vector<1x8x1024xf32> to vector<8x1024xf32>
    %c0_5 = arith.constant 0 : index
    %c0_6 = arith.constant 0 : index
    %7 = vector.load %arg5[%c0_5, %c0_6] : memref<8x256xf32, #tpu.memory_space<vmem>>, vector<8x256xf32>
    %cst = arith.constant dense<0.000000e+00> : vector<8x1024xf32>
    %8 = tpu.matmul %7, %3, %cst {dimension_numbers = #tpu.dot_dimension_numbers<[1], [0], [0], [1], [0, 0, 1, 1], [], []>} : vector<8x256xf32>, vector<256x1024xf32>, vector<8x1024xf32> -> vector<8x1024xf32>
    %9 = arith.addf %6, %8 : vector<8x1024xf32>
    %10 = vector.extract_strided_slice %9 {offsets = [0, 0], sizes = [8, 256], strides = [1, 1]} : vector<8x1024xf32> to vector<8x256xf32>
    %11 = arith.negf %10 : vector<8x256xf32>
    %12 = math.exp %11 : vector<8x256xf32>
    %cst_7 = arith.constant 1.000000e+00 : f32
    %13 = vector.broadcast %cst_7 : f32 to vector<8x256xf32>
    %14 = arith.addf %13, %12 : vector<8x256xf32>
    %15 = arith.divf %13, %14 : vector<8x256xf32>
    %16 = vector.extract_strided_slice %9 {offsets = [0, 256], sizes = [8, 256], strides = [1, 1]} : vector<8x1024xf32> to vector<8x256xf32>
    %17 = arith.negf %16 : vector<8x256xf32>
    %18 = math.exp %17 : vector<8x256xf32>
    %cst_8 = arith.constant 1.000000e+00 : f32
    %19 = vector.broadcast %cst_8 : f32 to vector<8x256xf32>
    %20 = arith.addf %19, %18 : vector<8x256xf32>
    %21 = arith.divf %19, %20 : vector<8x256xf32>
    %22 = vector.extract_strided_slice %9 {offsets = [0, 512], sizes = [8, 256], strides = [1, 1]} : vector<8x1024xf32> to vector<8x256xf32>
    %23 = math.tanh %22 : vector<8x256xf32>
    %24 = vector.extract_strided_slice %9 {offsets = [0, 768], sizes = [8, 256], strides = [1, 1]} : vector<8x1024xf32> to vector<8x256xf32>
    %25 = arith.negf %24 : vector<8x256xf32>
    %26 = math.exp %25 : vector<8x256xf32>
    %cst_9 = arith.constant 1.000000e+00 : f32
    %27 = vector.broadcast %cst_9 : f32 to vector<8x256xf32>
    %28 = arith.addf %27, %26 : vector<8x256xf32>
    %29 = arith.divf %27, %28 : vector<8x256xf32>
    %c0_10 = arith.constant 0 : index
    %c0_11 = arith.constant 0 : index
    %30 = vector.load %arg6[%c0_10, %c0_11] : memref<8x256xf32, #tpu.memory_space<vmem>>, vector<8x256xf32>
    %31 = arith.mulf %21, %30 : vector<8x256xf32>
    %32 = arith.mulf %15, %23 : vector<8x256xf32>
    %33 = arith.addf %31, %32 : vector<8x256xf32>
    %34 = math.tanh %33 : vector<8x256xf32>
    %35 = arith.mulf %29, %34 : vector<8x256xf32>
    %c0_12 = arith.constant 0 : index
    %c0_13 = arith.constant 0 : index
    %36 = vector.load %arg6[%c0_12, %c0_13] : memref<8x256xf32, #tpu.memory_space<vmem>>, vector<8x256xf32>
    tpu.vector_store %arg6[%c0_12, %c0_13], %33 {strides = array<i32>} : memref<8x256xf32, #tpu.memory_space<vmem>>, vector<8x256xf32>,
    %c0_14 = arith.constant 0 : index
    %c0_15 = arith.constant 0 : index
    %37 = vector.load %arg5[%c0_14, %c0_15] : memref<8x256xf32, #tpu.memory_space<vmem>>, vector<8x256xf32>
    tpu.vector_store %arg5[%c0_14, %c0_15], %35 {strides = array<i32>} : memref<8x256xf32, #tpu.memory_space<vmem>>, vector<8x256xf32>,
    %c1_i32 = arith.constant 1 : i32
    %38 = arith.index_cast %c1_i32 : i32 to index
    %c0_16 = arith.constant 0 : index
    %c0_17 = arith.constant 0 : index
    %39 = vector.load %arg2[%38, %c0_16, %c0_17] : memref<2x8x1024xf32, #tpu.memory_space<vmem>>, vector<1x8x1024xf32>
    %40 = vector.shape_cast %39 : vector<1x8x1024xf32> to vector<8x1024xf32>
    %c0_18 = arith.constant 0 : index
    %c0_19 = arith.constant 0 : index
    %41 = vector.load %arg5[%c0_18, %c0_19] : memref<8x256xf32, #tpu.memory_space<vmem>>, vector<8x256xf32>
    %cst_20 = arith.constant dense<0.000000e+00> : vector<8x1024xf32>
    %42 = tpu.matmul %41, %3, %cst_20 {dimension_numbers = #tpu.dot_dimension_numbers<[1], [0], [0], [1], [0, 0, 1, 1], [], []>} : vector<8x256xf32>, vector<256x1024xf32>, vector<8x1024xf32> -> vector<8x1024xf32>
    %43 = arith.addf %40, %42 : vector<8x1024xf32>
    %44 = vector.extract_strided_slice %43 {offsets = [0, 0], sizes = [8, 256], strides = [1, 1]} : vector<8x1024xf32> to vector<8x256xf32>
    %45 = arith.negf %44 : vector<8x256xf32>
    %46 = math.exp %45 : vector<8x256xf32>
    %cst_21 = arith.constant 1.000000e+00 : f32
    %47 = vector.broadcast %cst_21 : f32 to vector<8x256xf32>
    %48 = arith.addf %47, %46 : vector<8x256xf32>
    %49 = arith.divf %47, %48 : vector<8x256xf32>
    %50 = vector.extract_strided_slice %43 {offsets = [0, 256], sizes = [8, 256], strides = [1, 1]} : vector<8x1024xf32> to vector<8x256xf32>
    %51 = arith.negf %50 : vector<8x256xf32>
    %52 = math.exp %51 : vector<8x256xf32>
    %cst_22 = arith.constant 1.000000e+00 : f32
    %53 = vector.broadcast %cst_22 : f32 to vector<8x256xf32>
    %54 = arith.addf %53, %52 : vector<8x256xf32>
    %55 = arith.divf %53, %54 : vector<8x256xf32>
    %56 = vector.extract_strided_slice %43 {offsets = [0, 512], sizes = [8, 256], strides = [1, 1]} : vector<8x1024xf32> to vector<8x256xf32>
    %57 = math.tanh %56 : vector<8x256xf32>
    %58 = vector.extract_strided_slice %43 {offsets = [0, 768], sizes = [8, 256], strides = [1, 1]} : vector<8x1024xf32> to vector<8x256xf32>
    %59 = arith.negf %58 : vector<8x256xf32>
    %60 = math.exp %59 : vector<8x256xf32>
    %cst_23 = arith.constant 1.000000e+00 : f32
    %61 = vector.broadcast %cst_23 : f32 to vector<8x256xf32>
    %62 = arith.addf %61, %60 : vector<8x256xf32>
    %63 = arith.divf %61, %62 : vector<8x256xf32>
    %c0_24 = arith.constant 0 : index
    %c0_25 = arith.constant 0 : index
    %64 = vector.load %arg6[%c0_24, %c0_25] : memref<8x256xf32, #tpu.memory_space<vmem>>, vector<8x256xf32>
    %65 = arith.mulf %55, %64 : vector<8x256xf32>
    %66 = arith.mulf %49, %57 : vector<8x256xf32>
    %67 = arith.addf %65, %66 : vector<8x256xf32>
    %68 = math.tanh %67 : vector<8x256xf32>
    %69 = arith.mulf %63, %68 : vector<8x256xf32>
    %c0_26 = arith.constant 0 : index
    %c0_27 = arith.constant 0 : index
    %70 = vector.load %arg6[%c0_26, %c0_27] : memref<8x256xf32, #tpu.memory_space<vmem>>, vector<8x256xf32>
    tpu.vector_store %arg6[%c0_26, %c0_27], %67 {strides = array<i32>} : memref<8x256xf32, #tpu.memory_space<vmem>>, vector<8x256xf32>,
    %c0_28 = arith.constant 0 : index
    %c0_29 = arith.constant 0 : index
    %71 = vector.load %arg5[%c0_28, %c0_29] : memref<8x256xf32, #tpu.memory_space<vmem>>, vector<8x256xf32>
    tpu.vector_store %arg5[%c0_28, %c0_29], %69 {strides = array<i32>} : memref<8x256xf32, #tpu.memory_space<vmem>>, vector<8x256xf32>,
    %c2_i32 = arith.constant 2 : i32
    %c0_30 = arith.constant 0 : index
    %c0_31 = arith.constant 0 : index
    %72 = vector.load %arg5[%c0_30, %c0_31] : memref<8x256xf32, #tpu.memory_space<vmem>>, vector<8x256xf32>
    %c0_32 = arith.constant 0 : index
    %c0_33 = arith.constant 0 : index
    %73 = vector.load %arg4[%c0_32, %c0_33] : memref<8x256xf32, #tpu.memory_space<vmem>>, vector<8x256xf32>
    tpu.vector_store %arg4[%c0_32, %c0_33], %72 {strides = array<i32>} : memref<8x256xf32, #tpu.memory_space<vmem>>, vector<8x256xf32>,
    return
  }
  func.func @transform_0(%arg0: i32, %arg1: i32) -> (i32, i32, i32) {
    %c0_i32 = arith.constant 0 : i32
    %c0_i32_0 = arith.constant 0 : i32
    return %arg1, %arg0, %c0_i32 : i32, i32, i32
  }
  func.func @transform_1(%arg0: i32, %arg1: i32) -> (i32, i32) {
    %c0_i32 = arith.constant 0 : i32
    %c0_i32_0 = arith.constant 0 : i32
    %c0_i32_1 = arith.constant 0 : i32
    return %c0_i32, %c0_i32_0 : i32, i32
  }
  func.func @transform_2(%arg0: i32, %arg1: i32) -> (i32, i32) {
    %c0_i32 = arith.constant 0 : i32
    %c0_i32_0 = arith.constant 0 : i32
    return %arg0, %c0_i32 : i32, i32
  }
}

</mosaic_0001>

<bundles_post_ra>
// kernel: tpu_custom_call.1
= control target key start
LH: loop header
LB: loop body
LE: loop exit
PB: predicated region body
PF: predicated region fallthrough
CT: control target
= control target key end

     0   :  { %s3060_s0 = inlined_call_operand.hbm [shape: f32[4,16,1024], index: 0, kind: input, shape index: {}]   ;;  %s3061_s1 = inlined_call_operand.hbm [shape: f32[256,1024], index: 1, kind: input, shape index: {}]   ;;  %s3062_s2 = inlined_call_operand.hbm [shape: f32[16,256], index: 2, kind: output, shape index: {}]  }
   0x1   :  { %3150 = sst [smem:[#allocation92_spill]] %s3061_s1 }
   0x2   :  { %7 = vsyncpa [#allocation5], 0 }
   0x3   :  { %9 = vsyncpa [#allocation5 + $0x1], 0 }
   0x4   :  { %10 = vsyncpa [#allocation8], 0 }
   0x5   :  { %11 = vsyncpa [#allocation6], 0 }
   0x6   :  { %13 = vsyncpa [#allocation6 + $0x1], 0  ;;  %s2228_s9 = smov 0   ;;  %s2230_s10 = smov 0  }
   0x7   :  { %s2232_s11 = smov 0   ;;  %s2234_s12 = smov 0  }
   0x8   :  { %s2236_s13 = smov 0   ;;  %s2238_s14 = smov 0  }
   0x9   :  { %s2240_s15 = smov 0   ;;  %s2242_s16 = smov 0  }
   0xa   :  { %s2244_s17 = smov 0   ;;  %s2246_s18 = smov 0  }
   0xb   :  { %s2248_s19 = smov 0  }
   0xc LB: > { %3151 = sst [smem:[#allocation13_spill]] %s2164_s9  ;;  %s1285_s20 = sadd.s32 4294967295, %s2204_s19   ;;  %s2204_s19 = sphi %s2248_s19, %s19_s19   ;;  %s2200_s18 = sphi %s2246_s18, %s3337_s18   ;;  %s2196_s17 = sphi %s2244_s17, %s3336_s17   ;;  %s2192_s16 = sphi %s2242_s16, %s3335_s16   ;;  %s2188_s15 = sphi %s2240_s15, %s3334_s15   ;;  %s2184_s14 = sphi %s2238_s14, %s3333_s14   ;;  %s2180_s13 = sphi %s2236_s13, %s3332_s13   ;;  %s2176_s12 = sphi %s2234_s12, %s3331_s12   ;;  %s2172_s11 = sphi %s2232_s11, %s3330_s11   ;;  %s2168_s10 = sphi %s2230_s10, %s3329_s10   ;;  %s2164_s9 = sphi %s2228_s9, %s3328_s9  }
   0xd   : > { %s1286_s21 = sadd.s32 4294967294, %s2204_s19   ;;  %p47_p0 = scmp.ne.s32.totalorder %s2184_s14, %s2180_s13 }
   0xe   : > { %p48_p1 = scmp.eq.s32.totalorder %s2204_s19, 0  ;;  %p53_p2 = scmp.ne.s32.totalorder %s2180_s13, %s2176_s12 }
   0xf   : > { %p2288_p3 = scmp.eq.s32.totalorder %s1285_s20, 0  ;;  %p97_p5 = scmp.ne.s32.totalorder %s2172_s11, %s2168_s10 }
  0x10   : > { %p2293_p4 = por %p48_p1, %p47_p0  ;;  %p98_p7 = scmp.eq.s32.totalorder %s1285_s20, 3 }
  0x11   : > { %s3152_s23 = scalar_select %p2288_p3, 1, 0 }
  0x12   : > { %p2301_p6 = por %p2288_p3, %p53_p2  ;;  %p103_p8 = scmp.ne.s32.totalorder %s2168_s10, %s2164_s9 }
  0x13   : > { %p104_p9 = scmp.eq.s32.totalorder %s1286_s21, 3  ;;  %p2307_p10 = por %p98_p7, %p97_p5 }
  0x14   : > { %s3154_s26 = scalar_select %p2301_p6, 1, 0 }
  0x15   : > { %s3155_s27 = scalar_select %p2307_p10, 1, 0 }
  0x16   : > { %p1287_p11 = scmp.ge.s32.totalorder %s2204_s19, 1  ;;  %p2312_p12 = por %p104_p9, %p103_p8 }
  0x17   : > { %p111_p13 = scmp.lt.s32.totalorder %s2204_s19, 5  ;;  %s2206_s30 = smov [#allocation7]  }
  0x18   : > { %s3156_s28 = scalar_select %p2312_p12, 1, 0 }
  0x19   : > { %p2317_p0 = pnand %p1287_p11, %p111_p13  ;;  %s123_s3 = sshll.u32 %s2206_s30, 4  ;;  %s124_s3 = int_to_ptr.vmem [resolvable:$true] %s123_s3 }
  0x1a   : > { %3157 = sst [smem:[#allocation14_spill]] %s3156_s28  ;;  %p1860_p2 = scmp.lt.s32.totalorder %s2204_s19, 4 }
  0x1b   : > { %s3158_s29 = scalar_select %p2317_p0, 1, 0 }
  0x1c   : > { %p1847_p1 = pneg %p2317_p0  ;;  %p2332_p7 = pnand %p1860_p2, %p2293_p4 }
  0x1d   : > { %s3161_s1 = sld [smem:[#allocation92_spill]] }
  0x1e   : > { %p2326_p5 = pnand %p1847_p1, %p2288_p3 }
  0x1f   : > { %s3160_s5 = scalar_select %p2332_p7, 1, 0 }
  0x20   : > { %p2022_p9 = pneg %p2326_p5 }
  0x23   : > { %s2020_s8 = scalar_lea.hbm %s3161_s1, 32768 }
  0x24   : > { %p2021_p8 = scmp.ne.s32.totalorder %s3161_s1, %s2020_s8  ;;  %p2027_p1 = scmp.lt.u32.totalorder %s2020_s8, %s3161_s1 }
  0x26   : > { %p2023_p11 = pnand %p2022_p9, %p2021_p8 }
  0x28   : > { %p2024_p13 = pneg %p2023_p11 }
  0x2a   : > { %p2029_p4 = pnand %p2027_p1, %p2024_p13 }
  0x2c   : > { %2032 = shalt.err (!%p2029_p4)
}
  0x2d   : > { %s2033_s25 = scalar_lea.vmem %s124_s3, 32768  ;;  %p2041_p3 = scmp.lt.s32.totalorder %s124_s3, %s124_s3 }
  0x2e   : > { %p2034_p2 = scmp.ne.s32.totalorder %s124_s3, %s2033_s25  ;;  %p2042_p6 = scmp.lt.s32.totalorder %s2033_s25, %s2033_s25 }
  0x30   : > { %p2036_p12 = pnand %p2034_p2, %p2022_p9  ;;  %p2043_p0 = por %p2042_p6, %p2041_p3 }
  0x32   : > { %p2037_p10 = pneg %p2036_p12 }
  0x34   : > { %p2044_p7 = pnand %p2043_p0, %p2037_p10 }
  0x36   : > { %2047 = shalt.err (!%p2044_p7)
}
  0x37   : > { %s3069_s6 = smov 1024   ;;  %s3070_s7 = smov 64  }
  0x38   : > { %1850 = dma.hbm_to_vmem [thread:$0]  (!%p2326_p5), %s3161_s1, 32768, %s124_s3, [#allocation8], %s3069_s6, %s3069_s6, %s3070_s7  }
  0x39   : > { %s28_s20 = sadd.s32 1, %s2196_s17  ;;  %s31_s21 = sadd.s32 1, %s2200_s18 }
  0x3a   : > { %p29_p3 = scmp.ge.s32.totalorder %s28_s20, 2  ;;  %s137_s30 = sand.u32 1, %s2184_s14  }
  0x3b   : > { %s1290_s25 = sshll.u32 %s137_s30, 7  ;;  %s1292_s22 = sshll.u32 %s2200_s18, 3 }
  0x3c   : > { %s3339_s20 = smov (%p29_p3, %s28_s20), 0  ;;  %s3341_s21 = smov (!%p29_p3, %s31_s21), %s2200_s18 }
  0x3d   : > { %3162 = sst [smem:[#allocation15_spill]] %s3339_s20  ;;  %s35_s4 = ssub.s32 %s2196_s17, %s3339_s20 }
  0x3e   : > { %p33_p6 = scmp.ge.s32.totalorder %s3341_s21, 2  ;;  %s1325_s24 = sshll.u32 %s2196_s17, 5 }
  0x3f   : > { %s141_s8 = scalar_lea.vmem [#allocation4], %s1290_s25  ;;  %s148_s12 = sadd.s32 %s1325_s24, %s1292_s22 }
  0x40   : > { %s151_s3 = sshll.u32 %s141_s8, 4  ;;  %s3343_s21 = smov (%p33_p6, %s3341_s21), 0  ;;  %s2367_s3 = int_to_ptr.vmem [resolvable:$true] %s151_s3 }
  0x41   : > { %3163 = sst [smem:[#allocation16_spill]] %s3343_s21  ;;  %s36_s6 = ssub.s32 %s2200_s18, %s3343_s21 }
  0x42   : > { %s1294_s7 = sshll.u32 %s148_s12, 7  ;;  %s37_s1 = sor.u32 %s36_s6, %s35_s4 }
  0x43   : > { %p85_p10 = scmp.eq.s32.totalorder %s36_s6, 0  ;;  %p38_p12 = scmp.eq.s32.totalorder %s37_s1, 0 }
  0x44   : > { %s2374_s9 = scalar_lea.hbm %s3060_s0, %s1294_s7  ;;  %s3164_s25 = sadd.s32 1, %s2172_s11 }
  0x45   : > { %s2379_s8 = scalar_select %p85_p10, %s2172_s11, %s3164_s25  }
  0x46   : > { %s3165_s22 = sadd.s32 1, %s2184_s14  ;;  %s2386_s21 = scalar_lea.sflag [#allocation5], %s137_s30 }
  0x47   : > { %s2384_s24 = scalar_select %p38_p12, %s2184_s14, %s3165_s22  }
  0x48   : > { %s2048_s4 = scalar_lea.hbm %s2374_s9, 2048  ;;  %p3166_p5 = scmp.ne.s32.totalorder %s3160_s5, 0 }
  0x49   : > { %p2049_p0 = scmp.ne.s32.totalorder %s2374_s9, %s2048_s4  ;;  %s2053_s6 = scalar_lea.hbm %s3060_s0, 8192 }
  0x4a   : > { %p2050_p7 = pneg %p3166_p5  ;;  %p2054_p11 = scmp.lt.u32.totalorder %s2374_s9, %s3060_s0 }
  0x4b   : > { %p2055_p13 = scmp.lt.u32.totalorder %s2053_s6, %s2048_s4  ;;  %p2057_p4 = scmp.lt.u32.totalorder %s2048_s4, %s2374_s9 }
  0x4c   : > { %p2051_p8 = pnand %p2050_p7, %p2049_p0 }
  0x4d   : > { %p2056_p1 = por %p2055_p13, %p2054_p11 }
  0x4e   : > { %p2052_p9 = pneg %p2051_p8 }
  0x4f   : > { %p2058_p2 = por %p2057_p4, %p2056_p1 }
  0x51   : > { %p2059_p3 = pnand %p2058_p2, %p2052_p9 }
  0x53   : > { %2062 = shalt.err (!%p2059_p3)
}
  0x54   : > { %s2063_s30 = scalar_lea.vmem %s2367_s3, 2048  ;;  %s2209_s12 = smov [#allocation4]  }
  0x55   : > { %p2064_p6 = scmp.ne.s32.totalorder %s2367_s3, %s2063_s30  ;;  %s2068_s25 = sshll.u32 %s2209_s12, 4  ;;  %s2069_s25 = int_to_ptr.vmem [resolvable:$false] %s2068_s25 }
  0x56   : > { %s2070_s22 = scalar_lea.vmem %s2069_s25, 4096  ;;  %p2071_p0 = scmp.lt.s32.totalorder %s2367_s3, %s2069_s25 }
  0x57   : > { %p2066_p10 = pnand %p2064_p6, %p2050_p7  ;;  %p2072_p8 = scmp.lt.s32.totalorder %s2070_s22, %s2063_s30 }
  0x59   : > { %p2067_p12 = pneg %p2066_p10  ;;  %p2073_p11 = por %p2072_p8, %p2071_p0 }
  0x5b   : > { %p2074_p13 = pnand %p2073_p11, %p2067_p12 }
  0x5d   : > { %2077 = shalt.err (!%p2074_p13)
}
  0x5e   : > { %s2210_s4 = smov 2048   ;;  %s3167_s1 = smov 64  }
  0x5f   : > { %s3168_s28 = smov 1024   ;;  %p3169_p7 = scmp.ne.s32.totalorder %s3158_s29, 0 }
  0x60   : > { %1854 = dma.hbm_to_vmem [thread:$0]  (!%p3166_p5), %s2374_s9, 2048, %s2367_s3, %s2386_s21, %s2210_s4, %s3168_s28, %s3167_s1  }
  0x61   : > { %163 = sbr.rel (%p3169_p7) target bundleno = 821 (0x335), region = 28 }
  0x68   : > { %s165_s6 = sand.u32 1, %s2180_s13   ;;  %p3170_p9 = scmp.ne.s32.totalorder %s3154_s26, 0 }
  0x69   : > { %s1296_s7 = sshll.u32 %s165_s6, 7  ;;  %s166_s20 = scalar_lea.sflag [#allocation5], %s165_s6 }
  0x6a   : > { %s2419_s30 = scalar_lea.vmem [#allocation4], %s1296_s7 }
  0x6b   : > { %2151 = dma.done.wait (%p3170_p9), %s166_s20, 2048  }
  0x6c   : > { %2153 = vsyncadd (%p3170_p9), %s166_s20, 4294965248  ;;  %p3171_p1 = scmp.ne.s32.totalorder %s3152_s23, 0 }
  0x6e   : > { %2155 = dma.done.wait (%p3171_p1), [#allocation8], 32768  }
  0x6f   : > { %2157 = vsyncadd (%p3171_p1), [#allocation8], 4294934528  ;;  %s191_s9 = sand.u32 1, %s2168_s10   ;;  %p1299_p5 = scmp.ne.s32.totalorder %s2188_s15, 0 }
  0x70   : > { %s1298_s29 = sshll.u32 %s191_s9, 4  ;;  %v2211_v0 = vmov (!%p1299_p5), 0.0  }
  0x71   : > { %s2432_s5 = scalar_lea.vmem [#allocation9], %s1298_s29  ;;  %198 = sbr.rel (%p1299_p5) target bundleno = 120 (0x78), region = 40  ;;  %199 = vst [vmem:[#allocation2] sm:$0xff] (!%p1299_p5), %v2211_v0  ;;  %200 = vst [vmem:[#allocation2 + $0x8] sm:$0xff] (!%p1299_p5), %v2211_v0 }
  0x72   : > { %201 = vst [vmem:[#allocation3] sm:$0xff] (!%p1299_p5), %v2211_v0  ;;  %202 = vst [vmem:[#allocation3 + $0x8] sm:$0xff] (!%p1299_p5), %v2211_v0 }
  0x78 PF: > { %v204_v1 = vld [vmem:[#allocation7 + $0x8] sm:$0xff]  ;;  %v206_v3 = vld [vmem:[#allocation7 + $0x18] sm:$0xff]  ;;  %v203_v6 = vld [vmem:[#allocation7] sm:$0xff]  ;;  %s1326_s15 = sshll.u32 %s2192_s16, 8  ;;  %s1191_s23 = sshll.u32 %s2432_s5, 4  ;;  %s2997_s23 = int_to_ptr.vmem [resolvable:$true] %s1191_s23 }
  0x79   : > { %v212_v2 = vld [vmem:[#allocation7 + $0x48] sm:$0xff]  ;;  %v214_v5 = vld [vmem:[#allocation7 + $0x58] sm:$0xff]  ;;  %v211_v7 = vld [vmem:[#allocation7 + $0x40] sm:$0xff]  ;;  %s2995_s3 = scalar_lea.hbm %s3062_s2, %s1326_s15  ;;  %s1177_s16 = scalar_lea.sflag [#allocation6], %s191_s9 }
  0x7a   : > { %v2435_v4 = vpack.c.bf16 %v212_v2, %v204_v1  ;;  %v2437_v8 = vpack.c.bf16 %v214_v5, %v206_v3  ;;  %v2439_v9 = vpack.c.bf16 %v211_v7, %v203_v6  ;;  %v205_v10 = vld [vmem:[#allocation7 + $0x10] sm:$0xff]  ;;  %v220_v12 = vld [vmem:[#allocation7 + $0x88] sm:$0xff]  ;;  %v222_v15 = vld [vmem:[#allocation7 + $0x98] sm:$0xff]  ;;  %s2078_s12 = scalar_lea.vmem %s2997_s23, 256  ;;  %p3322_p2 = scmp.ne.s32.totalorder %s3155_s27, 0 }
  0x7b   : > { %v213_v11 = vld [vmem:[#allocation7 + $0x50] sm:$0xff]  ;;  %v228_v14 = vld [vmem:[#allocation7 + $0xc8] sm:$0xff]  ;;  %v230_v16 = vld [vmem:[#allocation7 + $0xd8] sm:$0xff]  ;;  %p2079_p4 = scmp.ne.s32.totalorder %s2997_s23, %s2078_s12  ;;  %s2212_s25 = smov [#allocation9]  }
  0x7c   : > { %1328 = vmatprep.subr.bf16.mxu0 %v2435_v4  ;;  %v2442_v13 = vpack.c.bf16 %v213_v11, %v205_v10  ;;  %1392 = vmatprep.subr.bf16.mxu1 %v2437_v8  ;;  %v2446_v17 = vpack.c.bf16 %v228_v14, %v220_v12  ;;  %v2448_v18 = vpack.c.bf16 %v230_v16, %v222_v15  ;;  %v219_v19 = vld [vmem:[#allocation7 + $0x80] sm:$0xff]  ;;  %v221_v21 = vld [vmem:[#allocation7 + $0x90] sm:$0xff]  ;;  %v236_v24 = vld [vmem:[#allocation7 + $0x108] sm:$0xff]  ;;  %s2082_s22 = sshll.u32 %s2212_s25, 4  ;;  %s2083_s22 = int_to_ptr.vmem [resolvable:$false] %s2082_s22 }
  0x7d   : > { %1330 = vmatpush1.bf16.msra.mxu0 %v2439_v9  ;;  %v227_v20 = vld [vmem:[#allocation7 + $0xc0] sm:$0xff]  ;;  %v229_v23 = vld [vmem:[#allocation7 + $0xd0] sm:$0xff]  ;;  %v244_v25 = vld [vmem:[#allocation7 + $0x148] sm:$0xff]  ;;  %p2080_p3 = pnand %p2079_p4, %p3322_p2  ;;  %s2084_s4 = scalar_lea.vmem %s2083_s22, 512 }
  0x7e   : > { %1394 = vmatpush1.bf16.msra.mxu1 %v2442_v13  ;;  %v2451_v22 = vpack.c.bf16 %v227_v20, %v219_v19  ;;  %1332 = vmatprep.subr.bf16.mxu0 %v2446_v17  ;;  %v2455_v26 = vpack.c.bf16 %v229_v23, %v221_v21  ;;  %v2457_v27 = vpack.c.bf16 %v244_v25, %v236_v24  ;;  %v238_v28 = vld [vmem:[#allocation7 + $0x118] sm:$0xff]  ;;  %v235_v30 = vld [vmem:[#allocation7 + $0x100] sm:$0xff]  ;;  %v237_v33 = vld [vmem:[#allocation7 + $0x110] sm:$0xff]  ;;  %p2085_p10 = scmp.lt.s32.totalorder %s2997_s23, %s2083_s22  ;;  %p2086_p12 = scmp.lt.s32.totalorder %s2084_s4, %s2078_s12 }
  0x7f   : > { %1396 = vmatprep.subr.bf16.mxu1 %v2448_v18  ;;  %v246_v29 = vld [vmem:[#allocation7 + $0x158] sm:$0xff]  ;;  %v243_v32 = vld [vmem:[#allocation7 + $0x140] sm:$0xff]  ;;  %v245_v34 = vld [vmem:[#allocation7 + $0x150] sm:$0xff]  ;;  %p2081_p6 = pneg %p2080_p3 }
  0x80   : > { %v2459_v31 = vpack.c.bf16 %v246_v29, %v238_v28  ;;  %v2462_v35 = vpack.c.bf16 %v243_v32, %v235_v30  ;;  %v252_v36 = vld [vmem:[#allocation7 + $0x188] sm:$0xff]  ;;  %v254_v38 = vld [vmem:[#allocation7 + $0x198] sm:$0xff]  ;;  %v2466_v39 = vpack.c.bf16 %v245_v34, %v237_v33  ;;  %v251_v42 = vld [vmem:[#allocation7 + $0x180] sm:$0xff]  ;;  %p2087_p0 = por %p2086_p12, %p2085_p10 }
  0x81   : > { %1334 = vmatpush1.bf16.msra.mxu0 %v2451_v22  ;;  %v260_v37 = vld [vmem:[#allocation7 + $0x1c8] sm:$0xff]  ;;  %v262_v41 = vld [vmem:[#allocation7 + $0x1d8] sm:$0xff]  ;;  %v259_v43 = vld [vmem:[#allocation7 + $0x1c0] sm:$0xff] }
  0x82   : > { %1398 = vmatpush1.bf16.msra.mxu1 %v2455_v26  ;;  %1336 = vmatprep.subr.bf16.mxu0 %v2457_v27  ;;  %v2468_v40 = vpack.c.bf16 %v260_v37, %v252_v36  ;;  %v2471_v44 = vpack.c.bf16 %v262_v41, %v254_v38  ;;  %v253_v45 = vld [vmem:[#allocation7 + $0x190] sm:$0xff]  ;;  %v268_v47 = vld [vmem:[#allocation7 + $0x208] sm:$0xff]  ;;  %v270_v49 = vld [vmem:[#allocation7 + $0x218] sm:$0xff]  ;;  %v2474_v51 = vpack.c.bf16 %v259_v43, %v251_v42  ;;  %p2088_p8 = pnand %p2087_p0, %p2081_p6 }
  0x83   : > { %1400 = vmatprep.subr.bf16.mxu1 %v2459_v31  ;;  %v261_v46 = vld [vmem:[#allocation7 + $0x1d0] sm:$0xff]  ;;  %v276_v48 = vld [vmem:[#allocation7 + $0x248] sm:$0xff]  ;;  %v278_v50 = vld [vmem:[#allocation7 + $0x258] sm:$0xff] }
  0x84   : > { %v2478_v52 = vpack.c.bf16 %v261_v46, %v253_v45  ;;  %v2480_v53 = vpack.c.bf16 %v276_v48, %v268_v47  ;;  %v267_v54 = vld [vmem:[#allocation7 + $0x200] sm:$0xff]  ;;  %v269_v56 = vld [vmem:[#allocation7 + $0x210] sm:$0xff]  ;;  %v2483_v57 = vpack.c.bf16 %v278_v50, %v270_v49  ;;  %v284_v59 = vld [vmem:[#allocation7 + $0x288] sm:$0xff] }
  0x85   : > { %1338 = vmatpush1.bf16.msra.mxu0 %v2462_v35  ;;  %v275_v55 = vld [vmem:[#allocation7 + $0x240] sm:$0xff]  ;;  %v277_v58 = vld [vmem:[#allocation7 + $0x250] sm:$0xff]  ;;  %v292_v60 = vld [vmem:[#allocation7 + $0x2c8] sm:$0xff] }
  0x86   : > { %1402 = vmatpush1.bf16.msra.mxu1 %v2466_v39  ;;  %1340 = vmatprep.subr.bf16.mxu0 %v2468_v40  ;;  %v286_v61 = vld [vmem:[#allocation7 + $0x298] sm:$0xff]  ;;  %v2486_v63 = vpack.c.bf16 %v275_v55, %v267_v54  ;;  %v2490_v0 = vpack.c.bf16 %v277_v58, %v269_v56  ;;  %v2492_v1 = vpack.c.bf16 %v292_v60, %v284_v59  ;;  %v283_v2 = vld [vmem:[#allocation7 + $0x280] sm:$0xff]  ;;  %v285_v5 = vld [vmem:[#allocation7 + $0x290] sm:$0xff] }
  0x87   : > { %1404 = vmatprep.subr.bf16.mxu1 %v2471_v44  ;;  %v294_v62 = vld [vmem:[#allocation7 + $0x2d8] sm:$0xff]  ;;  %v291_v3 = vld [vmem:[#allocation7 + $0x2c0] sm:$0xff]  ;;  %v293_v7 = vld [vmem:[#allocation7 + $0x2d0] sm:$0xff] }
  0x88   : > { %v2495_v6 = vpack.c.bf16 %v294_v62, %v286_v61  ;;  %v300_v10 = vld [vmem:[#allocation7 + $0x308] sm:$0xff]  ;;  %v302_v12 = vld [vmem:[#allocation7 + $0x318] sm:$0xff]  ;;  %v2498_v15 = vpack.c.bf16 %v291_v3, %v283_v2  ;;  %v2502_v16 = vpack.c.bf16 %v293_v7, %v285_v5  ;;  %v299_v20 = vld [vmem:[#allocation7 + $0x300] sm:$0xff] }
  0x89   : > { %1342 = vmatpush1.bf16.msra.mxu0 %v2474_v51  ;;  %v308_v11 = vld [vmem:[#allocation7 + $0x348] sm:$0xff]  ;;  %v310_v14 = vld [vmem:[#allocation7 + $0x358] sm:$0xff]  ;;  %v307_v21 = vld [vmem:[#allocation7 + $0x340] sm:$0xff] }
  0x8a   : > { %1406 = vmatpush1.bf16.msra.mxu1 %v2478_v52  ;;  %1344 = vmatprep.subr.bf16.mxu0 %v2480_v53  ;;  %v2504_v19 = vpack.c.bf16 %v308_v11, %v300_v10  ;;  %v301_v23 = vld [vmem:[#allocation7 + $0x310] sm:$0xff]  ;;  %v2507_v24 = vpack.c.bf16 %v310_v14, %v302_v12  ;;  %v316_v28 = vld [vmem:[#allocation7 + $0x388] sm:$0xff]  ;;  %v318_v30 = vld [vmem:[#allocation7 + $0x398] sm:$0xff]  ;;  %v2510_v33 = vpack.c.bf16 %v307_v21, %v299_v20 }
  0x8b   : > { %1408 = vmatprep.subr.bf16.mxu1 %v2483_v57  ;;  %v309_v25 = vld [vmem:[#allocation7 + $0x350] sm:$0xff]  ;;  %v324_v29 = vld [vmem:[#allocation7 + $0x3c8] sm:$0xff]  ;;  %v326_v32 = vld [vmem:[#allocation7 + $0x3d8] sm:$0xff] }
  0x8c   : > { %v2514_v34 = vpack.c.bf16 %v309_v25, %v301_v23  ;;  %v2516_v36 = vpack.c.bf16 %v324_v29, %v316_v28  ;;  %v315_v37 = vld [vmem:[#allocation7 + $0x380] sm:$0xff]  ;;  %v317_v41 = vld [vmem:[#allocation7 + $0x390] sm:$0xff]  ;;  %v2519_v42 = vpack.c.bf16 %v326_v32, %v318_v30  ;;  %v332_v45 = vld [vmem:[#allocation7 + $0x408] sm:$0xff] }
  0x8d   : > { %1346 = vmatpush1.bf16.msra.mxu0 %v2486_v63  ;;  %v323_v38 = vld [vmem:[#allocation7 + $0x3c0] sm:$0xff]  ;;  %v325_v43 = vld [vmem:[#allocation7 + $0x3d0] sm:$0xff]  ;;  %v340_v46 = vld [vmem:[#allocation7 + $0x448] sm:$0xff] }
  0x8e   : > { %1410 = vmatpush1.bf16.msra.mxu1 %v2490_v0  ;;  %1348 = vmatprep.subr.bf16.mxu0 %v2492_v1  ;;  %v334_v47 = vld [vmem:[#allocation7 + $0x418] sm:$0xff]  ;;  %v2522_v49 = vpack.c.bf16 %v323_v38, %v315_v37  ;;  %v2526_v50 = vpack.c.bf16 %v325_v43, %v317_v41  ;;  %v2528_v54 = vpack.c.bf16 %v340_v46, %v332_v45  ;;  %v331_v55 = vld [vmem:[#allocation7 + $0x400] sm:$0xff]  ;;  %v333_v58 = vld [vmem:[#allocation7 + $0x410] sm:$0xff] }
  0x8f   : > { %1412 = vmatprep.subr.bf16.mxu1 %v2495_v6  ;;  %v342_v48 = vld [vmem:[#allocation7 + $0x458] sm:$0xff]  ;;  %v339_v56 = vld [vmem:[#allocation7 + $0x440] sm:$0xff]  ;;  %v341_v60 = vld [vmem:[#allocation7 + $0x450] sm:$0xff] }
  0x90   : > { %v2531_v59 = vpack.c.bf16 %v342_v48, %v334_v47  ;;  %v348_v61 = vld [vmem:[#allocation7 + $0x488] sm:$0xff]  ;;  %v350_v2 = vld [vmem:[#allocation7 + $0x498] sm:$0xff]  ;;  %v2534_v5 = vpack.c.bf16 %v339_v56, %v331_v55  ;;  %v2538_v7 = vpack.c.bf16 %v341_v60, %v333_v58  ;;  %v347_v11 = vld [vmem:[#allocation7 + $0x480] sm:$0xff] }
  0x91   : > { %1350 = vmatpush1.bf16.msra.mxu0 %v2498_v15  ;;  %v356_v62 = vld [vmem:[#allocation7 + $0x4c8] sm:$0xff]  ;;  %v358_v3 = vld [vmem:[#allocation7 + $0x4d8] sm:$0xff]  ;;  %v355_v12 = vld [vmem:[#allocation7 + $0x4c0] sm:$0xff] }
  0x92   : > { %1414 = vmatpush1.bf16.msra.mxu1 %v2502_v16  ;;  %1352 = vmatprep.subr.bf16.mxu0 %v2504_v19  ;;  %v2540_v10 = vpack.c.bf16 %v356_v62, %v348_v61  ;;  %v349_v14 = vld [vmem:[#allocation7 + $0x490] sm:$0xff]  ;;  %v2543_v20 = vpack.c.bf16 %v358_v3, %v350_v2  ;;  %v364_v23 = vld [vmem:[#allocation7 + $0x508] sm:$0xff]  ;;  %v366_v28 = vld [vmem:[#allocation7 + $0x518] sm:$0xff]  ;;  %v2546_v30 = vpack.c.bf16 %v355_v12, %v347_v11 }
  0x93   : > { %1416 = vmatprep.subr.bf16.mxu1 %v2507_v24  ;;  %v357_v21 = vld [vmem:[#allocation7 + $0x4d0] sm:$0xff]  ;;  %v372_v25 = vld [vmem:[#allocation7 + $0x548] sm:$0xff]  ;;  %v374_v29 = vld [vmem:[#allocation7 + $0x558] sm:$0xff] }
  0x94   : > { %v2550_v32 = vpack.c.bf16 %v357_v21, %v349_v14  ;;  %v2552_v37 = vpack.c.bf16 %v372_v25, %v364_v23  ;;  %v363_v38 = vld [vmem:[#allocation7 + $0x500] sm:$0xff]  ;;  %v365_v43 = vld [vmem:[#allocation7 + $0x510] sm:$0xff]  ;;  %v2555_v45 = vpack.c.bf16 %v374_v29, %v366_v28  ;;  %v380_v47 = vld [vmem:[#allocation7 + $0x588] sm:$0xff] }
  0x95   : > { %1354 = vmatpush1.bf16.msra.mxu0 %v2510_v33  ;;  %v371_v41 = vld [vmem:[#allocation7 + $0x540] sm:$0xff]  ;;  %v373_v46 = vld [vmem:[#allocation7 + $0x550] sm:$0xff]  ;;  %v388_v48 = vld [vmem:[#allocation7 + $0x5c8] sm:$0xff] }
  0x96   : > { %1418 = vmatpush1.bf16.msra.mxu1 %v2514_v34  ;;  %1356 = vmatprep.subr.bf16.mxu0 %v2516_v36  ;;  %3172 = vst [vmem:[#allocation17_spill] sm:$0xff] %v2555_v45  ;;  %v382_v55 = vld [vmem:[#allocation7 + $0x598] sm:$0xff]  ;;  %v2558_v58 = vpack.c.bf16 %v371_v41, %v363_v38  ;;  %v379_v60 = vld [vmem:[#allocation7 + $0x580] sm:$0xff]  ;;  %v2562_v61 = vpack.c.bf16 %v373_v46, %v365_v43  ;;  %v381_v3 = vld [vmem:[#allocation7 + $0x590] sm:$0xff] }
  0x97   : > { %1420 = vmatprep.subr.bf16.mxu1 %v2519_v42  ;;  %v390_v56 = vld [vmem:[#allocation7 + $0x5d8] sm:$0xff]  ;;  %v2564_v62 = vpack.c.bf16 %v388_v48, %v380_v47  ;;  %v387_v2 = vld [vmem:[#allocation7 + $0x5c0] sm:$0xff]  ;;  %v389_v11 = vld [vmem:[#allocation7 + $0x5d0] sm:$0xff] }
  0x98   : > { %3173 = vst [vmem:[#allocation18_spill] sm:$0xff] %v2558_v58  ;;  %3174 = vst [vmem:[#allocation19_spill] sm:$0xff] %v2562_v61  ;;  %v2567_v12 = vpack.c.bf16 %v390_v56, %v382_v55  ;;  %v396_v14 = vld [vmem:[#allocation7 + $0x608] sm:$0xff]  ;;  %v398_v25 = vld [vmem:[#allocation7 + $0x618] sm:$0xff]  ;;  %v2574_v29 = vpack.c.bf16 %v387_v2, %v379_v60  ;;  %v2578_v38 = vpack.c.bf16 %v389_v11, %v381_v3 }
  0x99   : > { %1358 = vmatpush1.bf16.msra.mxu0 %v2522_v49  ;;  %3175 = vst [vmem:[#allocation20_spill] sm:$0xff] %v2564_v62  ;;  %v404_v21 = vld [vmem:[#allocation7 + $0x648] sm:$0xff]  ;;  %v406_v28 = vld [vmem:[#allocation7 + $0x658] sm:$0xff]  ;;  %v395_v43 = vld [vmem:[#allocation7 + $0x600] sm:$0xff] }
  0x9a   : > { %1422 = vmatpush1.bf16.msra.mxu1 %v2526_v50  ;;  %1360 = vmatprep.subr.bf16.mxu0 %v2528_v54  ;;  %3176 = vst [vmem:[#allocation21_spill] sm:$0xff] %v2567_v12  ;;  %v2569_v23 = vld [vmem:[#allocation2 + $0x8] sm:$0xff]  ;;  %3177 = vst [vmem:[#allocation22_spill] sm:$0xff] %v2574_v29  ;;  %v2580_v41 = vpack.c.bf16 %v404_v21, %v396_v14  ;;  %v403_v46 = vld [vmem:[#allocation7 + $0x640] sm:$0xff]  ;;  %v2583_v48 = vpack.c.bf16 %v406_v28, %v398_v25 }
  0x9b   : > { %1424 = vmatprep.subr.bf16.mxu1 %v2531_v59  ;;  %533 = vmatprep.mubr.f32.mxu0 %v2569_v23  ;;  %3178 = vst [vmem:[#allocation23_spill] sm:$0xff] %v2578_v38  ;;  %v397_v47 = vld [vmem:[#allocation7 + $0x610] sm:$0xff]  ;;  %v412_v56 = vld [vmem:[#allocation7 + $0x688] sm:$0xff]  ;;  %v414_v60 = vld [vmem:[#allocation7 + $0x698] sm:$0xff] }
  0x9c   : > { %604 = vmatprep.mubr.f32.mxu1 %v2569_v23  ;;  %3179 = vst [vmem:[#allocation24_spill] sm:$0xff] %v2580_v41  ;;  %3180 = vst [vmem:[#allocation25_spill] sm:$0xff] %v2583_v48  ;;  %v405_v55 = vld [vmem:[#allocation7 + $0x650] sm:$0xff]  ;;  %v422_v2 = vld [vmem:[#allocation7 + $0x6d8] sm:$0xff] }
  0x9d   : > { %1362 = vmatpush1.bf16.msra.mxu0 %v2534_v5  ;;  %v2590_v3 = vpack.c.bf16 %v405_v55, %v397_v47  ;;  %v411_v14 = vld [vmem:[#allocation7 + $0x680] sm:$0xff]  ;;  %v413_v25 = vld [vmem:[#allocation7 + $0x690] sm:$0xff]  ;;  %v2595_v28 = vpack.c.bf16 %v422_v2, %v414_v60 }
  0x9e   : > { %1426 = vmatpush1.bf16.msra.mxu1 %v2538_v7  ;;  %1364 = vmatprep.subr.bf16.mxu0 %v2540_v10  ;;  %v419_v21 = vld [vmem:[#allocation7 + $0x6c0] sm:$0xff]  ;;  %v429_v60 = vld [vmem:[#allocation7 + $0x710] sm:$0xff] }
  0x9f   : > { %1428 = vmatprep.subr.bf16.mxu1 %v2543_v20  ;;  %3182 = vst [vmem:[#allocation27_spill] sm:$0xff] %v2590_v3  ;;  %3184 = vst [vmem:[#allocation29_spill] sm:$0xff] %v2595_v28  ;;  %v427_v55 = vld [vmem:[#allocation7 + $0x700] sm:$0xff] }
  0xa1   : > { %1366 = vmatpush1.bf16.msra.mxu0 %v2546_v30 }
  0xa2   : > { %1430 = vmatpush1.bf16.msra.mxu1 %v2550_v32  ;;  %1368 = vmatprep.subr.bf16.mxu0 %v2552_v37 }
  0xa3   : > { %1432 = vmatprep.subr.bf16.mxu1 %v2555_v45  ;;  %v248_v45 = vld [vmem:[#allocation7 + $0x168] sm:$0xff] }
  0xa5   : > { %1370 = vmatpush1.bf16.msra.mxu0 %v2558_v58  ;;  %v420_v58 = vld [vmem:[#allocation7 + $0x6c8] sm:$0xff] }
  0xa6   : > { %1434 = vmatpush1.bf16.msra.mxu1 %v2562_v61  ;;  %1372 = vmatprep.subr.bf16.mxu0 %v2564_v62  ;;  %v2586_v61 = vpack.c.bf16 %v403_v46, %v395_v43  ;;  %v2592_v11 = vpack.c.bf16 %v420_v58, %v412_v56  ;;  %v428_v62 = vld [vmem:[#allocation7 + $0x708] sm:$0xff]  ;;  %v430_v43 = vld [vmem:[#allocation7 + $0x718] sm:$0xff]  ;;  %v435_v56 = vld [vmem:[#allocation7 + $0x740] sm:$0xff] }
  0xa7   : > { %1436 = vmatprep.subr.bf16.mxu1 %v2567_v12  ;;  %v421_v12 = vld [vmem:[#allocation7 + $0x6d0] sm:$0xff]  ;;  %v438_v46 = vld [vmem:[#allocation7 + $0x758] sm:$0xff] }
  0xa8   : > { %3181 = vst [vmem:[#allocation26_spill] sm:$0xff] %v2586_v61  ;;  %3183 = vst [vmem:[#allocation28_spill] sm:$0xff] %v2592_v11  ;;  %v2602_v58 = vpack.c.bf16 %v421_v12, %v413_v25  ;;  %v2607_v2 = vpack.c.bf16 %v438_v46, %v430_v43  ;;  %v451_v25 = vld [vmem:[#allocation7 + $0x7c0] sm:$0xff]  ;;  %v445_v43 = vld [vmem:[#allocation7 + $0x790] sm:$0xff] }
  0xa9   : > { %1374 = vmatpush1.bf16.msra.mxu0 %v2574_v29  ;;  %v436_v29 = vld [vmem:[#allocation7 + $0x748] sm:$0xff] }
  0xaa   : > { %1438 = vmatpush1.bf16.msra.mxu1 %v2578_v38  ;;  %1376 = vmatprep.subr.bf16.mxu0 %v2580_v41  ;;  %v2598_v38 = vpack.c.bf16 %v419_v21, %v411_v14  ;;  %3186 = vst [vmem:[#allocation31_spill] sm:$0xff] %v2602_v58  ;;  %v2604_v47 = vpack.c.bf16 %v436_v29, %v428_v62  ;;  %3188 = vst [vmem:[#allocation33_spill] sm:$0xff] %v2607_v2  ;;  %v444_v41 = vld [vmem:[#allocation7 + $0x788] sm:$0xff]  ;;  %v446_v14 = vld [vmem:[#allocation7 + $0x798] sm:$0xff] }
  0xab   : > { %1440 = vmatprep.subr.bf16.mxu1 %v2583_v48  ;;  %v437_v48 = vld [vmem:[#allocation7 + $0x750] sm:$0xff]  ;;  %v454_v21 = vld [vmem:[#allocation7 + $0x7d8] sm:$0xff]  ;;  %v443_v29 = vld [vmem:[#allocation7 + $0x780] sm:$0xff] }
  0xac   : > { %3185 = vst [vmem:[#allocation30_spill] sm:$0xff] %v2598_v38  ;;  %3187 = vst [vmem:[#allocation32_spill] sm:$0xff] %v2604_v47  ;;  %v2614_v62 = vpack.c.bf16 %v437_v48, %v429_v60  ;;  %v2619_v46 = vpack.c.bf16 %v454_v21, %v446_v14  ;;  %v207_v48 = vld [vmem:[#allocation7 + $0x20] sm:$0xff]  ;;  %v209_v14 = vld [vmem:[#allocation7 + $0x30] sm:$0xff] }
  0xad   : > { %1378 = vmatpush1.bf16.msra.mxu0 %v2586_v61  ;;  %v452_v61 = vld [vmem:[#allocation7 + $0x7c8] sm:$0xff]  ;;  %v215_v60 = vld [vmem:[#allocation7 + $0x60] sm:$0xff] }
  0xae   : > { %1442 = vmatpush1.bf16.msra.mxu1 %v2590_v3  ;;  %1380 = vmatprep.subr.bf16.mxu0 %v2592_v11  ;;  %v2610_v3 = vpack.c.bf16 %v435_v56, %v427_v55  ;;  %3190 = vst [vmem:[#allocation35_spill] sm:$0xff] %v2614_v62  ;;  %v2616_v12 = vpack.c.bf16 %v452_v61, %v444_v41  ;;  %3192 = vst [vmem:[#allocation37_spill] sm:$0xff] %v2619_v46  ;;  %v208_v11 = vld [vmem:[#allocation7 + $0x28] sm:$0xff]  ;;  %v210_v55 = vld [vmem:[#allocation7 + $0x38] sm:$0xff] }
  0xaf   : > { %1444 = vmatprep.subr.bf16.mxu1 %v2595_v28  ;;  %v453_v28 = vld [vmem:[#allocation7 + $0x7d0] sm:$0xff]  ;;  %v218_v56 = vld [vmem:[#allocation7 + $0x78] sm:$0xff] }
  0xb0   : > { %3189 = vst [vmem:[#allocation34_spill] sm:$0xff] %v2610_v3  ;;  %3191 = vst [vmem:[#allocation36_spill] sm:$0xff] %v2616_v12  ;;  %v2626_v61 = vpack.c.bf16 %v453_v28, %v445_v43  ;;  %v2631_v21 = vpack.c.bf16 %v218_v56, %v210_v55  ;;  %v2636_v28 = vpack.c.bf16 %v215_v60, %v207_v48  ;;  %v223_v43 = vld [vmem:[#allocation7 + $0xa0] sm:$0xff]  ;;  %v225_v56 = vld [vmem:[#allocation7 + $0xb0] sm:$0xff] }
  0xb1   : > { %1382 = vmatpush1.bf16.msra.mxu0 %v2598_v38  ;;  %v216_v38 = vld [vmem:[#allocation7 + $0x68] sm:$0xff]  ;;  %v231_v55 = vld [vmem:[#allocation7 + $0xe0] sm:$0xff]  ;;  %v242_v48 = vld [vmem:[#allocation7 + $0x138] sm:$0xff] }
  0xb2   : > { %1446 = vmatpush1.bf16.msra.mxu1 %v2602_v58  ;;  %1384 = vmatprep.subr.bf16.mxu0 %v2604_v47  ;;  %v2622_v58 = vpack.c.bf16 %v451_v25, %v443_v29  ;;  %3194 = vst [vmem:[#allocation39_spill] sm:$0xff] %v2626_v61  ;;  %v2628_v41 = vpack.c.bf16 %v216_v38, %v208_v11  ;;  %3196 = vst [vmem:[#allocation41_spill] sm:$0xff] %v2631_v21  ;;  %v224_v47 = vld [vmem:[#allocation7 + $0xa8] sm:$0xff]  ;;  %v226_v29 = vld [vmem:[#allocation7 + $0xb8] sm:$0xff] }
  0xb3   : > { %1448 = vmatprep.subr.bf16.mxu1 %v2607_v2  ;;  %v217_v2 = vld [vmem:[#allocation7 + $0x70] sm:$0xff]  ;;  %v234_v25 = vld [vmem:[#allocation7 + $0xf8] sm:$0xff]  ;;  %3197 = vst [vmem:[#allocation42_spill] sm:$0xff] %v2636_v28 }
  0xb4   : > { %3193 = vst [vmem:[#allocation38_spill] sm:$0xff] %v2622_v58  ;;  %3195 = vst [vmem:[#allocation40_spill] sm:$0xff] %v2628_v41  ;;  %v2640_v38 = vpack.c.bf16 %v217_v2, %v209_v14  ;;  %v250_v60 = vld [vmem:[#allocation7 + $0x178] sm:$0xff]  ;;  %v239_v14 = vld [vmem:[#allocation7 + $0x120] sm:$0xff] }
  0xb5   : > { %1386 = vmatpush1.bf16.msra.mxu0 %v2610_v3  ;;  %v232_v3 = vld [vmem:[#allocation7 + $0xe8] sm:$0xff] }
  0xb6   : > { %1450 = vmatpush1.bf16.msra.mxu1 %v2614_v62  ;;  %1388 = vmatprep.subr.bf16.mxu0 %v2616_v12  ;;  %v2634_v62 = vld [vmem:[#allocation2] sm:$0xff]  ;;  %v2642_v11 = vpack.c.bf16 %v232_v3, %v224_v47  ;;  %v240_v12 = vld [vmem:[#allocation7 + $0x128] sm:$0xff]  ;;  %v2650_v3 = vpack.c.bf16 %v231_v55, %v223_v43  ;;  %v258_v43 = vld [vmem:[#allocation7 + $0x1b8] sm:$0xff] }
  0xb7   : > { %1452 = vmatprep.subr.bf16.mxu1 %v2619_v46  ;;  %v2645_v46 = vpack.c.bf16 %v234_v25, %v226_v29  ;;  %v2656_v2 = vpack.c.bf16 %v248_v45, %v240_v12  ;;  %v247_v29 = vld [vmem:[#allocation7 + $0x160] sm:$0xff]  ;;  %v241_v25 = vld [vmem:[#allocation7 + $0x130] sm:$0xff]  ;;  %v266_v55 = vld [vmem:[#allocation7 + $0x1f8] sm:$0xff] }
  0xb8   : > { %3198 = vst [vmem:[#allocation43_spill] sm:$0xff] %v2642_v11  ;;  %3200 = vst [vmem:[#allocation45_spill] sm:$0xff] %v2650_v3  ;;  %v2664_v45 = vpack.c.bf16 %v247_v29, %v239_v14  ;;  %v274_v14 = vld [vmem:[#allocation7 + $0x238] sm:$0xff] }
  0xb9   : > { %1390 = vmatpush1.bf16.msra.mxu0 %v2622_v58  ;;  %3199 = vst [vmem:[#allocation44_spill] sm:$0xff] %v2645_v46  ;;  %v233_v58 = vld [vmem:[#allocation7 + $0xf0] sm:$0xff]  ;;  %3202 = vst [vmem:[#allocation47_spill] sm:$0xff] %v2656_v2  ;;  %v282_v29 = vld [vmem:[#allocation7 + $0x278] sm:$0xff] }
  0xba   : > { %1454 = vmatpush1.bf16.msra.mxu1 %v2626_v61  ;;  %1456 = vmatprep.subr.bf16.mxu0 %v2628_v41  ;;  %v2654_v47 = vpack.c.bf16 %v233_v58, %v225_v56  ;;  %v249_v41 = vld [vmem:[#allocation7 + $0x170] sm:$0xff]  ;;  %v256_v61 = vld [vmem:[#allocation7 + $0x1a8] sm:$0xff]  ;;  %3204 = vst [vmem:[#allocation49_spill] sm:$0xff] %v2664_v45  ;;  %v255_v56 = vld [vmem:[#allocation7 + $0x1a0] sm:$0xff] }
  0xbb   : > { %1520 = vmatprep.subr.bf16.mxu1 %v2631_v21  ;;  %v2659_v21 = vpack.c.bf16 %v250_v60, %v242_v48  ;;  %v2668_v58 = vpack.c.bf16 %v249_v41, %v241_v25  ;;  %v263_v48 = vld [vmem:[#allocation7 + $0x1e0] sm:$0xff]  ;;  %v257_v60 = vld [vmem:[#allocation7 + $0x1b0] sm:$0xff] }
  0xbc   : > { %534 = vmatmul.mubr.f32.vlgmr.msra.gmra.mrb[0].mxu0 %v2634_v62  ;;  %3201 = vst [vmem:[#allocation46_spill] sm:$0xff] %v2654_v47  ;;  %v279_v25 = vld [vmem:[#allocation7 + $0x260] sm:$0xff] }
  0xbd   : > { %605 = vmatmul.mubr.f32.vlgmr.msra.gmra.mrb[0].mxu1 %v2634_v62  ;;  %1458 = vmatpush1.bf16.msra.mxu0 %v2636_v28  ;;  %3203 = vst [vmem:[#allocation48_spill] sm:$0xff] %v2659_v21  ;;  %v264_v28 = vld [vmem:[#allocation7 + $0x1e8] sm:$0xff]  ;;  %3205 = vst [vmem:[#allocation50_spill] sm:$0xff] %v2668_v58 }
  0xbe   : > { %1522 = vmatpush1.bf16.msra.mxu1 %v2640_v38  ;;  %1460 = vmatprep.subr.bf16.mxu0 %v2642_v11  ;;  %v2670_v12 = vpack.c.bf16 %v264_v28, %v256_v61  ;;  %v272_v11 = vld [vmem:[#allocation7 + $0x228] sm:$0xff]  ;;  %v271_v28 = vld [vmem:[#allocation7 + $0x220] sm:$0xff] }
  0xbf   : > { %1524 = vmatprep.subr.bf16.mxu1 %v2645_v46  ;;  %675 = vmatprep.mubr.f32.mxu0 %v2569_v23  ;;  %v2673_v46 = vpack.c.bf16 %v266_v55, %v258_v43  ;;  %v273_v43 = vld [vmem:[#allocation7 + $0x230] sm:$0xff]  ;;  %v2685_v55 = vpack.c.bf16 %v282_v29, %v274_v14 }
  0xc0   : > { %746 = vmatprep.mubr.f32.mxu1 %v2569_v23  ;;  %3206 = vst [vmem:[#allocation51_spill] sm:$0xff] %v2670_v12  ;;  %v265_v23 = vld [vmem:[#allocation7 + $0x1f0] sm:$0xff] }
  0xc1   : > { %1462 = vmatpush1.bf16.msra.mxu0 %v2650_v3  ;;  %3207 = vst [vmem:[#allocation52_spill] sm:$0xff] %v2673_v46  ;;  %v280_v3 = vld [vmem:[#allocation7 + $0x268] sm:$0xff]  ;;  %v2680_v61 = vpack.c.bf16 %v265_v23, %v257_v60  ;;  %3211 = vst [vmem:[#allocation56_spill] sm:$0xff] %v2685_v55  ;;  %v287_v60 = vld [vmem:[#allocation7 + $0x2a0] sm:$0xff] }
  0xc2   : > { %1526 = vmatpush1.bf16.msra.mxu1 %v2654_v47  ;;  %1464 = vmatprep.subr.bf16.mxu0 %v2656_v2  ;;  %v2676_v47 = vpack.c.bf16 %v263_v48, %v255_v56  ;;  %v2682_v41 = vpack.c.bf16 %v280_v3, %v272_v11  ;;  %v288_v2 = vld [vmem:[#allocation7 + $0x2a8] sm:$0xff]  ;;  %v290_v56 = vld [vmem:[#allocation7 + $0x2b8] sm:$0xff]  ;;  %v295_v23 = vld [vmem:[#allocation7 + $0x2e0] sm:$0xff] }
  0xc3   : > { %1528 = vmatprep.subr.bf16.mxu1 %v2659_v21  ;;  %3209 = vst [vmem:[#allocation54_spill] sm:$0xff] %v2680_v61  ;;  %v281_v21 = vld [vmem:[#allocation7 + $0x270] sm:$0xff]  ;;  %v298_v48 = vld [vmem:[#allocation7 + $0x2f8] sm:$0xff] }
  0xc4   : > { %3208 = vst [vmem:[#allocation53_spill] sm:$0xff] %v2676_v47  ;;  %3210 = vst [vmem:[#allocation55_spill] sm:$0xff] %v2682_v41  ;;  %v2692_v11 = vpack.c.bf16 %v281_v21, %v273_v43  ;;  %v289_v14 = vld [vmem:[#allocation7 + $0x2b0] sm:$0xff]  ;;  %v2697_v29 = vpack.c.bf16 %v298_v48, %v290_v56  ;;  %v311_v43 = vld [vmem:[#allocation7 + $0x360] sm:$0xff] }
  0xc5   : > { %1466 = vmatpush1.bf16.msra.mxu0 %v2664_v45  ;;  %v296_v45 = vld [vmem:[#allocation7 + $0x2e8] sm:$0xff]  ;;  %v305_v56 = vld [vmem:[#allocation7 + $0x330] sm:$0xff] }
  0xc6   : > { %1530 = vmatpush1.bf16.msra.mxu1 %v2668_v58  ;;  %1468 = vmatprep.subr.bf16.mxu0 %v2670_v12  ;;  %v2688_v58 = vpack.c.bf16 %v279_v25, %v271_v28  ;;  %3213 = vst [vmem:[#allocation58_spill] sm:$0xff] %v2692_v11  ;;  %v2694_v3 = vpack.c.bf16 %v296_v45, %v288_v2  ;;  %3215 = vst [vmem:[#allocation60_spill] sm:$0xff] %v2697_v29  ;;  %v304_v12 = vld [vmem:[#allocation7 + $0x328] sm:$0xff]  ;;  %v306_v28 = vld [vmem:[#allocation7 + $0x338] sm:$0xff] }
  0xc7   : > { %1532 = vmatprep.subr.bf16.mxu1 %v2673_v46  ;;  %v297_v46 = vld [vmem:[#allocation7 + $0x2f0] sm:$0xff]  ;;  %v314_v25 = vld [vmem:[#allocation7 + $0x378] sm:$0xff]  ;;  %v303_v45 = vld [vmem:[#allocation7 + $0x320] sm:$0xff] }
  0xc8   : > { %3212 = vst [vmem:[#allocation57_spill] sm:$0xff] %v2688_v58  ;;  %3214 = vst [vmem:[#allocation59_spill] sm:$0xff] %v2694_v3  ;;  %v2704_v21 = vpack.c.bf16 %v297_v46, %v289_v14  ;;  %v2709_v48 = vpack.c.bf16 %v314_v25, %v306_v28  ;;  %v327_v14 = vld [vmem:[#allocation7 + $0x3e0] sm:$0xff]  ;;  %v321_v28 = vld [vmem:[#allocation7 + $0x3b0] sm:$0xff] }
  0xc9   : > { %1470 = vmatpush1.bf16.msra.mxu0 %v2676_v47  ;;  %v312_v47 = vld [vmem:[#allocation7 + $0x368] sm:$0xff] }
  0xca   : > { %1534 = vmatpush1.bf16.msra.mxu1 %v2680_v61  ;;  %1472 = vmatprep.subr.bf16.mxu0 %v2682_v41  ;;  %v2700_v61 = vpack.c.bf16 %v295_v23, %v287_v60  ;;  %3217 = vst [vmem:[#allocation62_spill] sm:$0xff] %v2704_v21  ;;  %v2706_v2 = vpack.c.bf16 %v312_v47, %v304_v12  ;;  %3219 = vst [vmem:[#allocation64_spill] sm:$0xff] %v2709_v48  ;;  %v320_v41 = vld [vmem:[#allocation7 + $0x3a8] sm:$0xff]  ;;  %v322_v60 = vld [vmem:[#allocation7 + $0x3b8] sm:$0xff] }
  0xcb   : > { %1536 = vmatprep.subr.bf16.mxu1 %v2685_v55  ;;  %v313_v55 = vld [vmem:[#allocation7 + $0x370] sm:$0xff]  ;;  %v330_v23 = vld [vmem:[#allocation7 + $0x3f8] sm:$0xff]  ;;  %v319_v12 = vld [vmem:[#allocation7 + $0x3a0] sm:$0xff] }
  0xcc   : > { %3216 = vst [vmem:[#allocation61_spill] sm:$0xff] %v2700_v61  ;;  %3218 = vst [vmem:[#allocation63_spill] sm:$0xff] %v2706_v2  ;;  %v2716_v46 = vpack.c.bf16 %v313_v55, %v305_v56  ;;  %v2721_v25 = vpack.c.bf16 %v330_v23, %v322_v60  ;;  %v335_v55 = vld [vmem:[#allocation7 + $0x420] sm:$0xff]  ;;  %v337_v60 = vld [vmem:[#allocation7 + $0x430] sm:$0xff] }
  0xcd   : > { %1474 = vmatpush1.bf16.msra.mxu0 %v2688_v58  ;;  %v328_v58 = vld [vmem:[#allocation7 + $0x3e8] sm:$0xff]  ;;  %v343_v56 = vld [vmem:[#allocation7 + $0x460] sm:$0xff] }
  0xce   : > { %1538 = vmatpush1.bf16.msra.mxu1 %v2692_v11  ;;  %1476 = vmatprep.subr.bf16.mxu0 %v2694_v3  ;;  %v2712_v11 = vpack.c.bf16 %v311_v43, %v303_v45  ;;  %3221 = vst [vmem:[#allocation66_spill] sm:$0xff] %v2716_v46  ;;  %v2718_v47 = vpack.c.bf16 %v328_v58, %v320_v41  ;;  %3223 = vst [vmem:[#allocation68_spill] sm:$0xff] %v2721_v25  ;;  %v336_v3 = vld [vmem:[#allocation7 + $0x428] sm:$0xff]  ;;  %v338_v45 = vld [vmem:[#allocation7 + $0x438] sm:$0xff] }
  0xcf   : > { %1540 = vmatprep.subr.bf16.mxu1 %v2697_v29  ;;  %v329_v29 = vld [vmem:[#allocation7 + $0x3f0] sm:$0xff]  ;;  %v346_v43 = vld [vmem:[#allocation7 + $0x478] sm:$0xff] }
  0xd0   : > { %3220 = vst [vmem:[#allocation65_spill] sm:$0xff] %v2712_v11  ;;  %3222 = vst [vmem:[#allocation67_spill] sm:$0xff] %v2718_v47  ;;  %v2728_v58 = vpack.c.bf16 %v329_v29, %v321_v28  ;;  %v2733_v23 = vpack.c.bf16 %v346_v43, %v338_v45  ;;  %v351_v29 = vld [vmem:[#allocation7 + $0x4a0] sm:$0xff]  ;;  %v353_v45 = vld [vmem:[#allocation7 + $0x4b0] sm:$0xff] }
  0xd1   : > { %1478 = vmatpush1.bf16.msra.mxu0 %v2700_v61  ;;  %v344_v61 = vld [vmem:[#allocation7 + $0x468] sm:$0xff]  ;;  %v359_v28 = vld [vmem:[#allocation7 + $0x4e0] sm:$0xff] }
  0xd2   : > { %1542 = vmatpush1.bf16.msra.mxu1 %v2704_v21  ;;  %1480 = vmatprep.subr.bf16.mxu0 %v2706_v2  ;;  %v2724_v21 = vpack.c.bf16 %v327_v14, %v319_v12  ;;  %3225 = vst [vmem:[#allocation70_spill] sm:$0xff] %v2728_v58  ;;  %v2730_v41 = vpack.c.bf16 %v344_v61, %v336_v3  ;;  %3227 = vst [vmem:[#allocation72_spill] sm:$0xff] %v2733_v23  ;;  %v352_v2 = vld [vmem:[#allocation7 + $0x4a8] sm:$0xff]  ;;  %v354_v12 = vld [vmem:[#allocation7 + $0x4b8] sm:$0xff] }
  0xd3   : > { %1544 = vmatprep.subr.bf16.mxu1 %v2709_v48  ;;  %v345_v48 = vld [vmem:[#allocation7 + $0x470] sm:$0xff]  ;;  %v362_v14 = vld [vmem:[#allocation7 + $0x4f8] sm:$0xff] }
  0xd4   : > { %3224 = vst [vmem:[#allocation69_spill] sm:$0xff] %v2724_v21  ;;  %3226 = vst [vmem:[#allocation71_spill] sm:$0xff] %v2730_v41  ;;  %v2740_v61 = vpack.c.bf16 %v345_v48, %v337_v60  ;;  %v2745_v43 = vpack.c.bf16 %v362_v14, %v354_v12  ;;  %v367_v48 = vld [vmem:[#allocation7 + $0x520] sm:$0xff]  ;;  %v369_v12 = vld [vmem:[#allocation7 + $0x530] sm:$0xff] }
  0xd5   : > { %1482 = vmatpush1.bf16.msra.mxu0 %v2712_v11  ;;  %v360_v11 = vld [vmem:[#allocation7 + $0x4e8] sm:$0xff]  ;;  %v375_v60 = vld [vmem:[#allocation7 + $0x560] sm:$0xff] }
  0xd6   : > { %1546 = vmatpush1.bf16.msra.mxu1 %v2716_v46  ;;  %1484 = vmatprep.subr.bf16.mxu0 %v2718_v47  ;;  %v2736_v46 = vpack.c.bf16 %v343_v56, %v335_v55  ;;  %3229 = vst [vmem:[#allocation74_spill] sm:$0xff] %v2740_v61  ;;  %v2742_v3 = vpack.c.bf16 %v360_v11, %v352_v2  ;;  %3231 = vst [vmem:[#allocation76_spill] sm:$0xff] %v2745_v43  ;;  %v368_v47 = vld [vmem:[#allocation7 + $0x528] sm:$0xff]  ;;  %v370_v55 = vld [vmem:[#allocation7 + $0x538] sm:$0xff] }
  0xd7   : > { %1548 = vmatprep.subr.bf16.mxu1 %v2721_v25  ;;  %v361_v25 = vld [vmem:[#allocation7 + $0x4f0] sm:$0xff]  ;;  %v378_v56 = vld [vmem:[#allocation7 + $0x578] sm:$0xff] }
  0xd8   : > { %3228 = vst [vmem:[#allocation73_spill] sm:$0xff] %v2736_v46  ;;  %3230 = vst [vmem:[#allocation75_spill] sm:$0xff] %v2742_v3  ;;  %v2752_v11 = vpack.c.bf16 %v361_v25, %v353_v45  ;;  %v2757_v14 = vpack.c.bf16 %v378_v56, %v370_v55  ;;  %v383_v25 = vld [vmem:[#allocation7 + $0x5a0] sm:$0xff]  ;;  %v385_v55 = vld [vmem:[#allocation7 + $0x5b0] sm:$0xff] }
  0xd9   : > { %1486 = vmatpush1.bf16.msra.mxu0 %v2724_v21  ;;  %v376_v21 = vld [vmem:[#allocation7 + $0x568] sm:$0xff]  ;;  %v391_v45 = vld [vmem:[#allocation7 + $0x5e0] sm:$0xff] }
  0xda   : > { %1550 = vmatpush1.bf16.msra.mxu1 %v2728_v58  ;;  %1488 = vmatprep.subr.bf16.mxu0 %v2730_v41  ;;  %v2748_v58 = vpack.c.bf16 %v359_v28, %v351_v29  ;;  %3233 = vst [vmem:[#allocation78_spill] sm:$0xff] %v2752_v11  ;;  %v2754_v2 = vpack.c.bf16 %v376_v21, %v368_v47  ;;  %3235 = vst [vmem:[#allocation80_spill] sm:$0xff] %v2757_v14  ;;  %v384_v41 = vld [vmem:[#allocation7 + $0x5a8] sm:$0xff]  ;;  %v386_v29 = vld [vmem:[#allocation7 + $0x5b8] sm:$0xff] }
  0xdb   : > { %1552 = vmatprep.subr.bf16.mxu1 %v2733_v23  ;;  %v377_v23 = vld [vmem:[#allocation7 + $0x570] sm:$0xff]  ;;  %v394_v28 = vld [vmem:[#allocation7 + $0x5f8] sm:$0xff] }
  0xdc   : > { %3232 = vst [vmem:[#allocation77_spill] sm:$0xff] %v2748_v58  ;;  %3234 = vst [vmem:[#allocation79_spill] sm:$0xff] %v2754_v2  ;;  %v2764_v21 = vpack.c.bf16 %v377_v23, %v369_v12  ;;  %v2769_v56 = vpack.c.bf16 %v394_v28, %v386_v29  ;;  %v399_v23 = vld [vmem:[#allocation7 + $0x620] sm:$0xff]  ;;  %v401_v29 = vld [vmem:[#allocation7 + $0x630] sm:$0xff] }
  0xdd   : > { %1490 = vmatpush1.bf16.msra.mxu0 %v2736_v46  ;;  %v392_v46 = vld [vmem:[#allocation7 + $0x5e8] sm:$0xff]  ;;  %v407_v12 = vld [vmem:[#allocation7 + $0x660] sm:$0xff] }
  0xde   : > { %1554 = vmatpush1.bf16.msra.mxu1 %v2740_v61  ;;  %1492 = vmatprep.subr.bf16.mxu0 %v2742_v3  ;;  %v2760_v61 = vpack.c.bf16 %v375_v60, %v367_v48  ;;  %3237 = vst [vmem:[#allocation82_spill] sm:$0xff] %v2764_v21  ;;  %v2766_v47 = vpack.c.bf16 %v392_v46, %v384_v41  ;;  %3239 = vst [vmem:[#allocation84_spill] sm:$0xff] %v2769_v56  ;;  %v400_v3 = vld [vmem:[#allocation7 + $0x628] sm:$0xff]  ;;  %v402_v48 = vld [vmem:[#allocation7 + $0x638] sm:$0xff] }
  0xdf   : > { %1556 = vmatprep.subr.bf16.mxu1 %v2745_v43  ;;  %v393_v43 = vld [vmem:[#allocation7 + $0x5f0] sm:$0xff]  ;;  %v410_v60 = vld [vmem:[#allocation7 + $0x678] sm:$0xff] }
  0xe0   : > { %3236 = vst [vmem:[#allocation81_spill] sm:$0xff] %v2760_v61  ;;  %3238 = vst [vmem:[#allocation83_spill] sm:$0xff] %v2766_v47  ;;  %v2776_v46 = vpack.c.bf16 %v393_v43, %v385_v55  ;;  %v2781_v28 = vpack.c.bf16 %v410_v60, %v402_v48  ;;  %v415_v43 = vld [vmem:[#allocation7 + $0x6a0] sm:$0xff]  ;;  %v417_v48 = vld [vmem:[#allocation7 + $0x6b0] sm:$0xff] }
  0xe1   : > { %1494 = vmatpush1.bf16.msra.mxu0 %v2748_v58  ;;  %v408_v58 = vld [vmem:[#allocation7 + $0x668] sm:$0xff]  ;;  %v423_v55 = vld [vmem:[#allocation7 + $0x6e0] sm:$0xff] }
  0xe2   : > { %1558 = vmatpush1.bf16.msra.mxu1 %v2752_v11  ;;  %1496 = vmatprep.subr.bf16.mxu0 %v2754_v2  ;;  %v2772_v11 = vpack.c.bf16 %v391_v45, %v383_v25  ;;  %3241 = vst [vmem:[#allocation86_spill] sm:$0xff] %v2776_v46  ;;  %v2778_v41 = vpack.c.bf16 %v408_v58, %v400_v3  ;;  %3243 = vst [vmem:[#allocation88_spill] sm:$0xff] %v2781_v28  ;;  %v416_v2 = vld [vmem:[#allocation7 + $0x6a8] sm:$0xff]  ;;  %v418_v25 = vld [vmem:[#allocation7 + $0x6b8] sm:$0xff] }
  0xe3   : > { %1560 = vmatprep.subr.bf16.mxu1 %v2757_v14  ;;  %v409_v14 = vld [vmem:[#allocation7 + $0x670] sm:$0xff]  ;;  %v426_v45 = vld [vmem:[#allocation7 + $0x6f8] sm:$0xff] }
  0xe4   : > { %3240 = vst [vmem:[#allocation85_spill] sm:$0xff] %v2772_v11  ;;  %3242 = vst [vmem:[#allocation87_spill] sm:$0xff] %v2778_v41  ;;  %v2788_v58 = vpack.c.bf16 %v409_v14, %v401_v29  ;;  %v2793_v60 = vpack.c.bf16 %v426_v45, %v418_v25  ;;  %v431_v14 = vld [vmem:[#allocation7 + $0x720] sm:$0xff]  ;;  %v433_v25 = vld [vmem:[#allocation7 + $0x730] sm:$0xff] }
  0xe5   : > { %1498 = vmatpush1.bf16.msra.mxu0 %v2760_v61  ;;  %v424_v61 = vld [vmem:[#allocation7 + $0x6e8] sm:$0xff]  ;;  %v439_v29 = vld [vmem:[#allocation7 + $0x760] sm:$0xff] }
  0xe6   : > { %1562 = vmatpush1.bf16.msra.mxu1 %v2764_v21  ;;  %1500 = vmatprep.subr.bf16.mxu0 %v2766_v47  ;;  %v2784_v21 = vpack.c.bf16 %v407_v12, %v399_v23  ;;  %3245 = vst [vmem:[#allocation90_spill] sm:$0xff] %v2788_v58  ;;  %v2790_v3 = vpack.c.bf16 %v424_v61, %v416_v2  ;;  %3246 = vst [vmem:[#allocation91_spill] sm:$0xff] %v2793_v60  ;;  %v432_v47 = vld [vmem:[#allocation7 + $0x728] sm:$0xff]  ;;  %v434_v23 = vld [vmem:[#allocation7 + $0x738] sm:$0xff] }
  0xe7   : > { %1564 = vmatprep.subr.bf16.mxu1 %v2769_v56  ;;  %v425_v56 = vld [vmem:[#allocation7 + $0x6f0] sm:$0xff]  ;;  %v442_v12 = vld [vmem:[#allocation7 + $0x778] sm:$0xff] }
  0xe8   : > { %3244 = vst [vmem:[#allocation89_spill] sm:$0xff] %v2784_v21  ;;  %v2800_v61 = vpack.c.bf16 %v425_v56, %v417_v48  ;;  %v2805_v45 = vpack.c.bf16 %v442_v12, %v434_v23  ;;  %v447_v56 = vld [vmem:[#allocation7 + $0x7a0] sm:$0xff]  ;;  %v449_v12 = vld [vmem:[#allocation7 + $0x7b0] sm:$0xff] }
  0xe9   : > { %1502 = vmatpush1.bf16.msra.mxu0 %v2772_v11  ;;  %v440_v11 = vld [vmem:[#allocation7 + $0x768] sm:$0xff]  ;;  %v455_v48 = vld [vmem:[#allocation7 + $0x7e0] sm:$0xff] }
  0xea   : > { %1566 = vmatpush1.bf16.msra.mxu1 %v2776_v46  ;;  %1504 = vmatprep.subr.bf16.mxu0 %v2778_v41  ;;  %v2796_v46 = vpack.c.bf16 %v423_v55, %v415_v43  ;;  %v2802_v2 = vpack.c.bf16 %v440_v11, %v432_v47  ;;  %v448_v41 = vld [vmem:[#allocation7 + $0x7a8] sm:$0xff]  ;;  %v450_v43 = vld [vmem:[#allocation7 + $0x7b8] sm:$0xff] }
  0xeb   : > { %1568 = vmatprep.subr.bf16.mxu1 %v2781_v28  ;;  %v441_v28 = vld [vmem:[#allocation7 + $0x770] sm:$0xff]  ;;  %v458_v55 = vld [vmem:[#allocation7 + $0x7f8] sm:$0xff] }
  0xec   : > { %v2812_v11 = vpack.c.bf16 %v441_v28, %v433_v25  ;;  %v2817_v23 = vpack.c.bf16 %v458_v55, %v450_v43 }
  0xed   : > { %1506 = vmatpush1.bf16.msra.mxu0 %v2784_v21  ;;  %v456_v21 = vld [vmem:[#allocation7 + $0x7e8] sm:$0xff] }
  0xee   : > { %1570 = vmatpush1.bf16.msra.mxu1 %v2788_v58  ;;  %1508 = vmatprep.subr.bf16.mxu0 %v2790_v3  ;;  %v2808_v58 = vpack.c.bf16 %v439_v29, %v431_v14  ;;  %v2814_v47 = vpack.c.bf16 %v456_v21, %v448_v41  ;;  %v2820_v14 = vpack.c.bf16 %v455_v48, %v447_v56  ;;  %v463_v56 = vld [vmem:[%s2419_s30 + $0x20] sm:$0xff]  ;;  %v465_v48 = vld [vmem:[%s2419_s30 + $0x30] sm:$0xff] }
  0xef   : > { %1572 = vmatprep.subr.bf16.mxu1 %v2793_v60  ;;  %v457_v60 = vld [vmem:[#allocation7 + $0x7f0] sm:$0xff] }
  0xf0   : > { %v2824_v28 = vpack.c.bf16 %v457_v60, %v449_v12  ;;  %v464_v12 = vld [vmem:[%s2419_s30 + $0x28] sm:$0xff] }
  0xf1   : > { %1510 = vmatpush1.bf16.msra.mxu0 %v2796_v46 }
  0xf2   : > { %1574 = vmatpush1.bf16.msra.mxu1 %v2800_v61  ;;  %1512 = vmatprep.subr.bf16.mxu0 %v2802_v2 }
  0xf3   : > { %1576 = vmatprep.subr.bf16.mxu1 %v2805_v45 }
  0xf5   : > { %1514 = vmatpush1.bf16.msra.mxu0 %v2808_v58 }
  0xf6   : > { %1578 = vmatpush1.bf16.msra.mxu1 %v2812_v11  ;;  %1516 = vmatprep.subr.bf16.mxu0 %v2814_v47 }
  0xf7   : > { %1580 = vmatprep.subr.bf16.mxu1 %v2817_v23 }
  0xf9   : > { %1518 = vmatpush1.bf16.msra.mxu0 %v2820_v14 }
  0xfa   : > { %1582 = vmatpush1.bf16.msra.mxu1 %v2824_v28  ;;  %1584 = vmatprep.subr.bf16.mxu0 %v2435_v4  ;;  %v3247_v4 = vld [vmem:[#allocation17_spill] sm:$0xff] }
  0xfb   : > { %1648 = vmatprep.subr.bf16.mxu1 %v2437_v8  ;;  %v3248_v8 = vld [vmem:[#allocation18_spill] sm:$0xff] }
  0xfc   : > { %676 = vmatmul.mubr.f32.vlgmr.msra.gmra.mrb[2].mxu0 %v2634_v62 }
  0xfd   : > { %747 = vmatmul.mubr.f32.vlgmr.msra.gmra.mrb[2].mxu1 %v2634_v62  ;;  %1586 = vmatpush1.bf16.msra.mxu0 %v2439_v9  ;;  %v3249_v9 = vld [vmem:[#allocation19_spill] sm:$0xff] }
  0xfe   : > { %1650 = vmatpush1.bf16.msra.mxu1 %v2442_v13  ;;  %1588 = vmatprep.subr.bf16.mxu0 %v2446_v17  ;;  %v3250_v13 = vld [vmem:[#allocation20_spill] sm:$0xff]  ;;  %v3251_v17 = vld [vmem:[#allocation21_spill] sm:$0xff] }
  0xff   : > { %1652 = vmatprep.subr.bf16.mxu1 %v2448_v18  ;;  %v3252_v18 = vld [vmem:[#allocation22_spill] sm:$0xff] }
 0x101   : > { %1590 = vmatpush1.bf16.msra.mxu0 %v2451_v22  ;;  %v3253_v22 = vld [vmem:[#allocation23_spill] sm:$0xff] }
 0x102   : > { %1654 = vmatpush1.bf16.msra.mxu1 %v2455_v26  ;;  %1592 = vmatprep.subr.bf16.mxu0 %v2457_v27  ;;  %v3254_v26 = vld [vmem:[#allocation24_spill] sm:$0xff]  ;;  %v3255_v27 = vld [vmem:[#allocation25_spill] sm:$0xff] }
 0x103   : > { %1656 = vmatprep.subr.bf16.mxu1 %v2459_v31  ;;  %v3256_v31 = vld [vmem:[#allocation26_spill] sm:$0xff] }
 0x105   : > { %1594 = vmatpush1.bf16.msra.mxu0 %v2462_v35  ;;  %v3257_v35 = vld [vmem:[#allocation27_spill] sm:$0xff] }
 0x106   : > { %1658 = vmatpush1.bf16.msra.mxu1 %v2466_v39  ;;  %1596 = vmatprep.subr.bf16.mxu0 %v2468_v40  ;;  %v3258_v39 = vld [vmem:[#allocation28_spill] sm:$0xff]  ;;  %v3259_v40 = vld [vmem:[#allocation29_spill] sm:$0xff] }
 0x107   : > { %1660 = vmatprep.subr.bf16.mxu1 %v2471_v44  ;;  %v3260_v44 = vld [vmem:[#allocation30_spill] sm:$0xff] }
 0x109   : > { %1598 = vmatpush1.bf16.msra.mxu0 %v2474_v51  ;;  %v3261_v51 = vld [vmem:[#allocation31_spill] sm:$0xff] }
 0x10a   : > { %1662 = vmatpush1.bf16.msra.mxu1 %v2478_v52  ;;  %1600 = vmatprep.subr.bf16.mxu0 %v2480_v53  ;;  %v3262_v52 = vld [vmem:[#allocation32_spill] sm:$0xff]  ;;  %v3263_v53 = vld [vmem:[#allocation33_spill] sm:$0xff] }
 0x10b   : > { %1664 = vmatprep.subr.bf16.mxu1 %v2483_v57  ;;  %v3264_v57 = vld [vmem:[#allocation34_spill] sm:$0xff] }
 0x10d   : > { %1602 = vmatpush1.bf16.msra.mxu0 %v2486_v63  ;;  %v3265_v63 = vld [vmem:[#allocation35_spill] sm:$0xff] }
 0x10e   : > { %1666 = vmatpush1.bf16.msra.mxu1 %v2490_v0  ;;  %1604 = vmatprep.subr.bf16.mxu0 %v2492_v1  ;;  %v3266_v0 = vld [vmem:[#allocation36_spill] sm:$0xff]  ;;  %v3267_v1 = vld [vmem:[#allocation37_spill] sm:$0xff] }
 0x10f   : > { %1668 = vmatprep.subr.bf16.mxu1 %v2495_v6  ;;  %v3268_v6 = vld [vmem:[#allocation38_spill] sm:$0xff] }
 0x111   : > { %1606 = vmatpush1.bf16.msra.mxu0 %v2498_v15  ;;  %v3269_v15 = vld [vmem:[#allocation39_spill] sm:$0xff] }
 0x112   : > { %1670 = vmatpush1.bf16.msra.mxu1 %v2502_v16  ;;  %1608 = vmatprep.subr.bf16.mxu0 %v2504_v19  ;;  %v3270_v16 = vld [vmem:[#allocation40_spill] sm:$0xff]  ;;  %v3271_v19 = vld [vmem:[#allocation41_spill] sm:$0xff] }
 0x113   : > { %1672 = vmatprep.subr.bf16.mxu1 %v2507_v24 }
 0x115   : > { %1610 = vmatpush1.bf16.msra.mxu0 %v2510_v33 }
 0x116   : > { %1674 = vmatpush1.bf16.msra.mxu1 %v2514_v34  ;;  %1612 = vmatprep.subr.bf16.mxu0 %v2516_v36 }
 0x117   : > { %1676 = vmatprep.subr.bf16.mxu1 %v2519_v42  ;;  %v459_v42 = vld [vmem:[%s2419_s30] sm:$0xff] }
 0x119   : > { %1614 = vmatpush1.bf16.msra.mxu0 %v2522_v49  ;;  %v461_v49 = vld [vmem:[%s2419_s30 + $0x10] sm:$0xff] }
 0x11a   : > { %1678 = vmatpush1.bf16.msra.mxu1 %v2526_v50  ;;  %1616 = vmatprep.subr.bf16.mxu0 %v2528_v54  ;;  %v460_v50 = vld [vmem:[%s2419_s30 + $0x8] sm:$0xff] }
 0x11b   : > { %1680 = vmatprep.subr.bf16.mxu1 %v2531_v59  ;;  %v462_v59 = vld [vmem:[%s2419_s30 + $0x18] sm:$0xff] }
 0x11d   : > { %1618 = vmatpush1.bf16.msra.mxu0 %v2534_v5 }
 0x11e   : > { %1682 = vmatpush1.bf16.msra.mxu1 %v2538_v7  ;;  %1620 = vmatprep.subr.bf16.mxu0 %v2540_v10 }
 0x11f   : > { %1684 = vmatprep.subr.bf16.mxu1 %v2543_v20 }
 0x121   : > { %1622 = vmatpush1.bf16.msra.mxu0 %v2546_v30 }
 0x122   : > { %1686 = vmatpush1.bf16.msra.mxu1 %v2550_v32  ;;  %1624 = vmatprep.subr.bf16.mxu0 %v2552_v37 }
 0x123   : > { %1688 = vmatprep.subr.bf16.mxu1 %v3247_v4 }
 0x125   : > { %1626 = vmatpush1.bf16.msra.mxu0 %v3248_v8  ;;  %v466_v8 = vld [vmem:[%s2419_s30 + $0x38] sm:$0xff] }
 0x126   : > { %1690 = vmatpush1.bf16.msra.mxu1 %v3249_v9  ;;  %1628 = vmatprep.subr.bf16.mxu0 %v3250_v13 }
 0x127   : > { %1692 = vmatprep.subr.bf16.mxu1 %v3251_v17 }
 0x129   : > { %1630 = vmatpush1.bf16.msra.mxu0 %v3252_v18 }
 0x12a   : > { %1694 = vmatpush1.bf16.msra.mxu1 %v3253_v22  ;;  %1632 = vmatprep.subr.bf16.mxu0 %v3254_v26 }
 0x12b   : > { %1696 = vmatprep.subr.bf16.mxu1 %v3255_v27 }
 0x12d   : > { %1634 = vmatpush1.bf16.msra.mxu0 %v3256_v31 }
 0x12e   : > { %1698 = vmatpush1.bf16.msra.mxu1 %v3257_v35  ;;  %1636 = vmatprep.subr.bf16.mxu0 %v3258_v39 }
 0x12f   : > { %1700 = vmatprep.subr.bf16.mxu1 %v3259_v40 }
 0x131   : > { %1638 = vmatpush1.bf16.msra.mxu0 %v3260_v44 }
 0x132   : > { %1702 = vmatpush1.bf16.msra.mxu1 %v3261_v51  ;;  %1640 = vmatprep.subr.bf16.mxu0 %v3262_v52  ;;  %v799_v51 = vld [vmem:[#allocation3] sm:$0xff] }
 0x133   : > { %1704 = vmatprep.subr.bf16.mxu1 %v3263_v53  ;;  %v800_v53 = vld [vmem:[#allocation3 + $0x8] sm:$0xff] }
 0x135   : > { %1642 = vmatpush1.bf16.msra.mxu0 %v3264_v57 }
 0x136   : > { %1706 = vmatpush1.bf16.msra.mxu1 %v3265_v63  ;;  %1644 = vmatprep.subr.bf16.mxu0 %v3266_v0 }
 0x137   : > { %1708 = vmatprep.subr.bf16.mxu1 %v3267_v1 }
 0x139   : > { %1646 = vmatpush1.bf16.msra.mxu0 %v3268_v6 }
 0x13a   : > { %1710 = vmatpush1.bf16.msra.mxu1 %v3269_v15  ;;  %1712 = vmatprep.subr.bf16.mxu0 %v3270_v16 }
 0x13b   : > { %1776 = vmatprep.subr.bf16.mxu1 %v3271_v19 }
 0x18f   : > { %v535_v24 = vpop.f32.mrb[0].mxu0 }
 0x190   : > { %v606_v33 = vpop.f32.mrb[0].mxu1  ;;  %v537_v34 = vpop.f32.mrb[1].mxu0  ;;  %v753_v54 = vadd.f32 %v535_v24, %v459_v42 }
 0x191   : > { %v608_v36 = vpop.f32.mrb[1].mxu1  ;;  %v755_v5 = vadd.f32 %v606_v33, %v461_v49  ;;  %v754_v7 = vadd.f32 %v537_v34, %v460_v50 }
 0x192   : > { %v756_v10 = vadd.f32 %v608_v36, %v462_v59  ;;  %v1300_v20 = vmul.f32 -1.442695, %v753_v54 }
 0x193   : > { %v1302_v30 = vmul.f32 -1.442695, %v755_v5  ;;  %v1301_v32 = vmul.f32 -1.442695, %v754_v7  ;;  %v3272_v7 = vld [vmem:[#allocation42_spill] sm:$0xff] }
 0x194   : > { %v1303_v37 = vmul.f32 -1.442695, %v756_v10  ;;  %1956 = vpow2.f32 %v1300_v20  ;;  %v3273_v10 = vld [vmem:[#allocation43_spill] sm:$0xff]  ;;  %v3274_v20 = vld [vmem:[#allocation44_spill] sm:$0xff] }
 0x195   : > { %1958 = vpow2.f32 %v1302_v30  ;;  %v3275_v30 = vld [vmem:[#allocation45_spill] sm:$0xff] }
 0x196   : > { %1960 = vpow2.f32 %v1301_v32  ;;  %v3276_v32 = vld [vmem:[#allocation46_spill] sm:$0xff] }
 0x197   : > { %1962 = vpow2.f32 %v1303_v37  ;;  %v3277_v37 = vld [vmem:[#allocation47_spill] sm:$0xff] }
 0x19e   : > { %v1957_v62 = vpop.eup %1956 }
 0x19f   : > { %v1959_v21 = vpop.eup %1958  ;;  %v767_v29 = vadd.f32 1.0, %v1957_v62  ;;  %v3278_v62 = vld [vmem:[#allocation48_spill] sm:$0xff] }
 0x1a0   : > { %v1961_v41 = vpop.eup %1960  ;;  %v779_v25 = vadd.f32 1.0, %v1959_v21  ;;  %v3279_v21 = vld [vmem:[#allocation49_spill] sm:$0xff] }
 0x1a1   : > { %v1963_v60 = vpop.eup %1962  ;;  %v768_v43 = vadd.f32 1.0, %v1961_v41  ;;  %1964 = vrcp.f32 %v767_v29  ;;  %v3280_v41 = vld [vmem:[#allocation50_spill] sm:$0xff]  ;;  %v3283_v29 = vld [vmem:[#allocation53_spill] sm:$0xff] }
 0x1a2   : > { %v780_v55 = vadd.f32 1.0, %v1963_v60  ;;  %1966 = vrcp.f32 %v779_v25  ;;  %v3281_v60 = vld [vmem:[#allocation51_spill] sm:$0xff]  ;;  %v3284_v25 = vld [vmem:[#allocation54_spill] sm:$0xff] }
 0x1a3   : > { %1968 = vrcp.f32 %v768_v43  ;;  %v3285_v43 = vld [vmem:[#allocation55_spill] sm:$0xff] }
 0x1a4   : > { %1970 = vrcp.f32 %v780_v55  ;;  %v3286_v55 = vld [vmem:[#allocation56_spill] sm:$0xff] }
 0x1ab   : > { %v1965_v39 = vpop.eup %1964 }
 0x1ac   : > { %v1967_v40 = vpop.eup %1966 }
 0x1ad   : > { %v1969_v44 = vpop.eup %1968  ;;  %v801_v0 = vmul.f32 %v1967_v40, %v799_v51  ;;  %v3302_v40 = vld [vmem:[#allocation72_spill] sm:$0xff]  ;;  %v3304_v51 = vld [vmem:[#allocation74_spill] sm:$0xff] }
 0x1ae   : > { %v1971_v52 = vpop.eup %1970 }
 0x1af   : > { %v802_v6 = vmul.f32 %v1971_v52, %v800_v53  ;;  %v3305_v52 = vld [vmem:[#allocation75_spill] sm:$0xff]  ;;  %v3306_v53 = vld [vmem:[#allocation76_spill] sm:$0xff] }
 0x1cf   : > { %v677_v4 = vpop.f32.mrb[2].mxu0 }
 0x1d0   : > { %v757_v9 = vadd.f32 %v677_v4, %v463_v56  ;;  %v748_v13 = vpop.f32.mrb[2].mxu1  ;;  %v679_v17 = vpop.f32.mrb[3].mxu0  ;;  %v3287_v56 = vld [vmem:[#allocation57_spill] sm:$0xff]  ;;  %v3290_v4 = vld [vmem:[#allocation60_spill] sm:$0xff] }
 0x1d1   : > { %v759_v18 = vadd.f32 %v748_v13, %v465_v48  ;;  %v758_v22 = vadd.f32 %v679_v17, %v464_v12  ;;  %v750_v26 = vpop.f32.mrb[3].mxu1  ;;  %v3288_v48 = vld [vmem:[#allocation58_spill] sm:$0xff]  ;;  %v3289_v12 = vld [vmem:[#allocation59_spill] sm:$0xff]  ;;  %v3294_v17 = vld [vmem:[#allocation64_spill] sm:$0xff] }
 0x1d2   : > { %1972 = vtanh.f32 %v757_v9  ;;  %v760_v27 = vadd.f32 %v750_v26, %v466_v8  ;;  %v3291_v8 = vld [vmem:[#allocation61_spill] sm:$0xff]  ;;  %v3292_v9 = vld [vmem:[#allocation62_spill] sm:$0xff]  ;;  %v3293_v13 = vld [vmem:[#allocation63_spill] sm:$0xff] }
 0x1d3   : > { %v1304_v31 = vmul.f32 -1.442695, %v759_v18  ;;  %1974 = vtanh.f32 %v758_v22  ;;  %v3295_v18 = vld [vmem:[#allocation65_spill] sm:$0xff]  ;;  %v3296_v22 = vld [vmem:[#allocation66_spill] sm:$0xff]  ;;  %v3297_v26 = vld [vmem:[#allocation67_spill] sm:$0xff] }
 0x1d4   : > { %v1305_v35 = vmul.f32 -1.442695, %v760_v27  ;;  %v3298_v27 = vld [vmem:[#allocation68_spill] sm:$0xff] }
 0x1d5   : > { %1976 = vpow2.f32 %v1304_v31  ;;  %v3299_v31 = vld [vmem:[#allocation69_spill] sm:$0xff] }
 0x1d6   : > { %1978 = vpow2.f32 %v1305_v35  ;;  %v3300_v35 = vld [vmem:[#allocation70_spill] sm:$0xff] }
 0x1dc   : > { %v1973_v57 = vpop.eup %1972 }
 0x1dd   : > { %v1975_v63 = vpop.eup %1974  ;;  %v803_v1 = vmul.f32 %v1973_v57, %v1965_v39  ;;  %v3301_v39 = vld [vmem:[#allocation71_spill] sm:$0xff]  ;;  %v3307_v57 = vld [vmem:[#allocation77_spill] sm:$0xff] }
 0x1de   : > { %v804_v15 = vmul.f32 %v1975_v63, %v1969_v44  ;;  %v3303_v44 = vld [vmem:[#allocation73_spill] sm:$0xff]  ;;  %v3308_v63 = vld [vmem:[#allocation78_spill] sm:$0xff] }
 0x1df   : > { %v1977_v16 = vpop.eup %1976  ;;  %v2905_v19 = vadd.f32 %v803_v1, %v801_v0  ;;  %v3309_v0 = vld [vmem:[#allocation79_spill] sm:$0xff]  ;;  %v3310_v1 = vld [vmem:[#allocation80_spill] sm:$0xff] }
 0x1e0   : > { %v1979_v24 = vpop.eup %1978  ;;  %v793_v33 = vadd.f32 1.0, %v1977_v16  ;;  %v2907_v34 = vadd.f32 %v804_v15, %v802_v6  ;;  %v3311_v6 = vld [vmem:[#allocation81_spill] sm:$0xff]  ;;  %v3312_v15 = vld [vmem:[#allocation82_spill] sm:$0xff]  ;;  %v3313_v16 = vld [vmem:[#allocation83_spill] sm:$0xff] }
 0x1e1   : > { %1980 = vtanh.f32 %v2905_v19  ;;  %v794_v36 = vadd.f32 1.0, %v1979_v24  ;;  %v3314_v24 = vld [vmem:[#allocation84_spill] sm:$0xff] }
 0x1e2   : > { %1982 = vrcp.f32 %v793_v33  ;;  %v3315_v33 = vld [vmem:[#allocation85_spill] sm:$0xff] }
 0x1e3   : > { %1984 = vtanh.f32 %v2907_v34 }
 0x1e4   : > { %1986 = vrcp.f32 %v794_v36  ;;  %v3316_v36 = vld [vmem:[#allocation86_spill] sm:$0xff] }
 0x1eb   : > { %v1981_v42 = vpop.eup %1980 }
 0x1ec   : > { %v1983_v49 = vpop.eup %1982 }
 0x1ed   : > { %v1985_v50 = vpop.eup %1984  ;;  %v2911_v5 = vmul.f32 %v1983_v49, %v1981_v42  ;;  %v3317_v42 = vld [vmem:[#allocation87_spill] sm:$0xff]  ;;  %v3318_v49 = vld [vmem:[#allocation88_spill] sm:$0xff] }
 0x1ee   : > { %v1987_v54 = vpop.eup %1986 }
 0x1ef   : > { %v810_v59 = vmul.f32 %v1987_v54, %v1985_v50  ;;  %v3319_v50 = vld [vmem:[#allocation89_spill] sm:$0xff]  ;;  %v3320_v54 = vld [vmem:[#allocation90_spill] sm:$0xff] }
 0x1f1   : > { %890 = vmatprep.mubr.f32.mxu0 %v810_v59  ;;  %961 = vmatprep.mubr.f32.mxu1 %v810_v59 }
 0x1f2   : > { %891 = vmatmul.mubr.f32.vlgmr.msra.gmra.mrb[4].mxu0 %v2911_v5  ;;  %962 = vmatmul.mubr.f32.vlgmr.msra.gmra.mrb[4].mxu1 %v2911_v5 }
 0x1f3   : > { %1714 = vmatpush1.bf16.msra.mxu0 %v3272_v7  ;;  %1778 = vmatpush1.bf16.msra.mxu1 %v2640_v38  ;;  %v3282_v38 = vld [vmem:[#allocation52_spill] sm:$0xff]  ;;  %v1307_v7 = vld [vmem:[%s2419_s30 + $0x48] sm:$0xff] }
 0x1f4   : > { %1032 = vmatprep.mubr.f32.mxu0 %v810_v59  ;;  %1103 = vmatprep.mubr.f32.mxu1 %v810_v59  ;;  %v3321_v59 = vld [vmem:[#allocation91_spill] sm:$0xff] }
 0x1f5   : > { %1716 = vmatprep.subr.bf16.mxu0 %v3273_v10  ;;  %1780 = vmatprep.subr.bf16.mxu1 %v3274_v20  ;;  %v1309_v10 = vld [vmem:[%s2419_s30 + $0x58] sm:$0xff] }
 0x1f7   : > { %1718 = vmatpush1.bf16.msra.mxu0 %v3275_v30  ;;  %1782 = vmatpush1.bf16.msra.mxu1 %v3276_v32 }
 0x1f8   : > { %1720 = vmatprep.subr.bf16.mxu0 %v3277_v37  ;;  %1784 = vmatprep.subr.bf16.mxu1 %v3278_v62 }
 0x1fb   : > { %1722 = vmatpush1.bf16.msra.mxu0 %v3279_v21  ;;  %1786 = vmatpush1.bf16.msra.mxu1 %v3280_v41 }
 0x1fc   : > { %1724 = vmatprep.subr.bf16.mxu0 %v3281_v60  ;;  %1788 = vmatprep.subr.bf16.mxu1 %v3282_v38 }
 0x1ff   : > { %1726 = vmatpush1.bf16.msra.mxu0 %v3283_v29  ;;  %1790 = vmatpush1.bf16.msra.mxu1 %v3284_v25  ;;  %v1310_v25 = vld [vmem:[%s2419_s30 + $0x60] sm:$0xff] }
 0x200   : > { %1728 = vmatprep.subr.bf16.mxu0 %v3285_v43  ;;  %1792 = vmatprep.subr.bf16.mxu1 %v3286_v55  ;;  %v1312_v43 = vld [vmem:[%s2419_s30 + $0x70] sm:$0xff]  ;;  %v1311_v55 = vld [vmem:[%s2419_s30 + $0x68] sm:$0xff] }
 0x203   : > { %1730 = vmatpush1.bf16.msra.mxu0 %v3287_v56  ;;  %1794 = vmatpush1.bf16.msra.mxu1 %v3288_v48  ;;  %v1313_v56 = vld [vmem:[%s2419_s30 + $0x78] sm:$0xff] }
 0x204   : > { %1732 = vmatprep.subr.bf16.mxu0 %v3289_v12  ;;  %1796 = vmatprep.subr.bf16.mxu1 %v3290_v4 }
 0x207   : > { %1734 = vmatpush1.bf16.msra.mxu0 %v3291_v8  ;;  %1798 = vmatpush1.bf16.msra.mxu1 %v3292_v9 }
 0x208   : > { %1736 = vmatprep.subr.bf16.mxu0 %v3293_v13  ;;  %1800 = vmatprep.subr.bf16.mxu1 %v3294_v17 }
 0x20b   : > { %1738 = vmatpush1.bf16.msra.mxu0 %v3295_v18  ;;  %1802 = vmatpush1.bf16.msra.mxu1 %v3296_v22 }
 0x20c   : > { %1740 = vmatprep.subr.bf16.mxu0 %v3297_v26  ;;  %1804 = vmatprep.subr.bf16.mxu1 %v3298_v27 }
 0x20f   : > { %1742 = vmatpush1.bf16.msra.mxu0 %v3299_v31  ;;  %1806 = vmatpush1.bf16.msra.mxu1 %v3300_v35 }
 0x210   : > { %1744 = vmatprep.subr.bf16.mxu0 %v3301_v39  ;;  %1808 = vmatprep.subr.bf16.mxu1 %v3302_v40 }
 0x213   : > { %1746 = vmatpush1.bf16.msra.mxu0 %v3303_v44  ;;  %1810 = vmatpush1.bf16.msra.mxu1 %v3304_v51 }
 0x214   : > { %1748 = vmatprep.subr.bf16.mxu0 %v3305_v52  ;;  %1812 = vmatprep.subr.bf16.mxu1 %v3306_v53 }
 0x217   : > { %1750 = vmatpush1.bf16.msra.mxu0 %v3307_v57  ;;  %1814 = vmatpush1.bf16.msra.mxu1 %v3308_v63 }
 0x218   : > { %1752 = vmatprep.subr.bf16.mxu0 %v3309_v0  ;;  %1816 = vmatprep.subr.bf16.mxu1 %v3310_v1 }
 0x21b   : > { %1754 = vmatpush1.bf16.msra.mxu0 %v3311_v6  ;;  %1818 = vmatpush1.bf16.msra.mxu1 %v3312_v15 }
 0x21c   : > { %1756 = vmatprep.subr.bf16.mxu0 %v3313_v16  ;;  %1820 = vmatprep.subr.bf16.mxu1 %v3314_v24 }
 0x21f   : > { %1758 = vmatpush1.bf16.msra.mxu0 %v3315_v33  ;;  %1822 = vmatpush1.bf16.msra.mxu1 %v3316_v36 }
 0x220   : > { %1760 = vmatprep.subr.bf16.mxu0 %v3317_v42  ;;  %1824 = vmatprep.subr.bf16.mxu1 %v3318_v49 }
 0x223   : > { %1762 = vmatpush1.bf16.msra.mxu0 %v3319_v50  ;;  %1826 = vmatpush1.bf16.msra.mxu1 %v3320_v54 }
 0x224   : > { %1764 = vmatprep.subr.bf16.mxu0 %v2790_v3  ;;  %1828 = vmatprep.subr.bf16.mxu1 %v3321_v59 }
 0x227   : > { %1766 = vmatpush1.bf16.msra.mxu0 %v2796_v46  ;;  %1830 = vmatpush1.bf16.msra.mxu1 %v2800_v61 }
 0x228   : > { %1768 = vmatprep.subr.bf16.mxu0 %v2802_v2  ;;  %1832 = vmatprep.subr.bf16.mxu1 %v2805_v45  ;;  %v1308_v45 = vld [vmem:[%s2419_s30 + $0x50] sm:$0xff] }
 0x22b   : > { %1770 = vmatpush1.bf16.msra.mxu0 %v2808_v58  ;;  %1834 = vmatpush1.bf16.msra.mxu1 %v2812_v11  ;;  %v1306_v58 = vld [vmem:[%s2419_s30 + $0x40] sm:$0xff] }
 0x22c   : > { %1772 = vmatprep.subr.bf16.mxu0 %v2814_v47  ;;  %1836 = vmatprep.subr.bf16.mxu1 %v2817_v23 }
 0x22f   : > { %1774 = vmatpush1.bf16.msra.mxu0 %v2820_v14  ;;  %1838 = vmatpush1.bf16.msra.mxu1 %v2824_v28 }
 0x232   : > { %1033 = vmatmul.mubr.f32.vlgmr.msra.gmra.mrb[6].mxu0 %v2911_v5  ;;  %1104 = vmatmul.mubr.f32.vlgmr.msra.gmra.mrb[6].mxu1 %v2911_v5 }
 0x2c5   : > { %v892_v46 = vpop.f32.mrb[4].mxu0  ;;  %v963_v3 = vpop.f32.mrb[4].mxu1 }
 0x2c6   : > { %v894_v61 = vpop.f32.mrb[5].mxu0  ;;  %v965_v2 = vpop.f32.mrb[5].mxu1  ;;  %v1110_v11 = vadd.f32 %v1306_v58, %v892_v46  ;;  %v1112_v47 = vadd.f32 %v1308_v45, %v963_v3 }
 0x2c7   : > { %v1111_v20 = vadd.f32 %v1307_v7, %v894_v61  ;;  %v1113_v23 = vadd.f32 %v1309_v10, %v965_v2 }
 0x2c8   : > { %v1314_v30 = vmul.f32 -1.442695, %v1110_v11  ;;  %v1316_v14 = vmul.f32 -1.442695, %v1112_v47 }
 0x2c9   : > { %v1315_v28 = vmul.f32 -1.442695, %v1111_v20  ;;  %v1317_v32 = vmul.f32 -1.442695, %v1113_v23 }
 0x2ca   : > { %1988 = vpow2.f32 %v1314_v30 }
 0x2cb   : > { %1990 = vpow2.f32 %v1316_v14 }
 0x2cc   : > { %1992 = vpow2.f32 %v1315_v28 }
 0x2cd   : > { %1994 = vpow2.f32 %v1317_v32 }
 0x2d4   : > { %v1989_v5 = vpop.eup %1988 }
 0x2d5   : > { %v1991_v37 = vpop.eup %1990  ;;  %v1124_v41 = vadd.f32 1.0, %v1989_v5 }
 0x2d6   : > { %v1993_v62 = vpop.eup %1992  ;;  %v1136_v60 = vadd.f32 1.0, %v1991_v37 }
 0x2d7   : > { %v1995_v21 = vpop.eup %1994  ;;  %v1125_v38 = vadd.f32 1.0, %v1993_v62  ;;  %1996 = vrcp.f32 %v1124_v41 }
 0x2d8   : > { %v1137_v29 = vadd.f32 1.0, %v1995_v21  ;;  %1998 = vrcp.f32 %v1136_v60 }
 0x2d9   : > { %2000 = vrcp.f32 %v1125_v38 }
 0x2da   : > { %2002 = vrcp.f32 %v1137_v29 }
 0x2e1   : > { %v1997_v27 = vpop.eup %1996 }
 0x2e2   : > { %v1999_v31 = vpop.eup %1998 }
 0x2e3   : > { %v2001_v35 = vpop.eup %2000  ;;  %v1158_v51 = vmul.f32 %v1999_v31, %v2905_v19 }
 0x2e4   : > { %v2003_v39 = vpop.eup %2002 }
 0x2e5   : > { %v1159_v57 = vmul.f32 %v2003_v39, %v2907_v34 }
 0x305   : > { %v1034_v48 = vpop.f32.mrb[6].mxu0  ;;  %v1105_v12 = vpop.f32.mrb[6].mxu1 }
 0x306   : > { %v1114_v4 = vadd.f32 %v1310_v25, %v1034_v48  ;;  %v1116_v8 = vadd.f32 %v1312_v43, %v1105_v12  ;;  %v1036_v9 = vpop.f32.mrb[7].mxu0  ;;  %v1107_v13 = vpop.f32.mrb[7].mxu1 }
 0x307   : > { %v1115_v17 = vadd.f32 %v1311_v55, %v1036_v9  ;;  %v1117_v18 = vadd.f32 %v1313_v56, %v1107_v13 }
 0x308   : > { %2004 = vtanh.f32 %v1114_v4  ;;  %v1318_v22 = vmul.f32 -1.442695, %v1116_v8 }
 0x309   : > { %2006 = vtanh.f32 %v1115_v17  ;;  %v1319_v26 = vmul.f32 -1.442695, %v1117_v18 }
 0x30a   : > { %2008 = vpow2.f32 %v1318_v22 }
 0x30b   : > { %2010 = vpow2.f32 %v1319_v26 }
 0x312   : > { %v2005_v40 = vpop.eup %2004 }
 0x313   : > { %v2007_v44 = vpop.eup %2006  ;;  %v1160_v52 = vmul.f32 %v2005_v40, %v1997_v27 }
 0x314   : > { %v2009_v53 = vpop.eup %2008  ;;  %v1161_v63 = vmul.f32 %v2007_v44, %v2001_v35 }
 0x315   : > { %v2011_v0 = vpop.eup %2010  ;;  %v1162_v1 = vadd.f32 %v1160_v52, %v1158_v51  ;;  %v1150_v6 = vadd.f32 1.0, %v2009_v53 }
 0x316   : > { %v1163_v15 = vadd.f32 %v1161_v63, %v1159_v57  ;;  %v1151_v16 = vadd.f32 1.0, %v2011_v0 }
 0x317   : > { %2012 = vtanh.f32 %v1162_v1  ;;  %1168 = vst [vmem:[#allocation3] sm:$0xff] %v1162_v1 }
 0x318   : > { %2014 = vrcp.f32 %v1150_v6  ;;  %1169 = vst [vmem:[#allocation3 + $0x8] sm:$0xff] %v1163_v15 }
 0x319   : > { %2016 = vtanh.f32 %v1163_v15 }
 0x31a   : > { %2018 = vrcp.f32 %v1151_v16 }
 0x321   : > { %v2013_v19 = vpop.eup %2012 }
 0x322   : > { %v2015_v24 = vpop.eup %2014 }
 0x323   : > { %v2017_v34 = vpop.eup %2016  ;;  %v1166_v33 = vmul.f32 %v2015_v24, %v2013_v19 }
 0x324   : > { %v2019_v36 = vpop.eup %2018 }
 0x325   : > { %1170 = vst [vmem:[#allocation2] sm:$0xff] %v1166_v33  ;;  %v1167_v42 = vmul.f32 %v2019_v36, %v2017_v34  ;;  %1174 = vst [vmem:[%s2432_s5] sm:$0xff] %v1166_v33 }
 0x327   : > { %1171 = vst [vmem:[#allocation2 + $0x8] sm:$0xff] %v1167_v42  ;;  %1175 = vst [vmem:[%s2432_s5 + $0x8] sm:$0xff] %v1167_v42 }
 0x328   : > { %2091 = shalt.err (!%p2088_p8)
}
 0x329   : > { %s2092_s1 = scalar_lea.hbm %s2995_s3, 256  ;;  %s2096_s7 = scalar_lea.hbm %s3062_s2, 512 }
 0x32a   : > { %p2093_p11 = scmp.ne.s32.totalorder %s2995_s3, %s2092_s1  ;;  %p2097_p9 = scmp.lt.u32.totalorder %s2995_s3, %s3062_s2 }
 0x32b   : > { %p2098_p1 = scmp.lt.u32.totalorder %s2096_s7, %s2092_s1  ;;  %p2100_p4 = scmp.lt.u32.totalorder %s2092_s1, %s2995_s3 }
 0x32c   : > { %p2094_p13 = pnand %p2093_p11, %p3322_p2 }
 0x32d   : > { %p2099_p5 = por %p2098_p1, %p2097_p9 }
 0x32e   : > { %p2095_p7 = pneg %p2094_p13 }
 0x32f   : > { %p2101_p3 = por %p2100_p4, %p2099_p5 }
 0x331   : > { %p2102_p6 = pnand %p2101_p3, %p2095_p7 }
 0x333   : > { %2105 = shalt.err (!%p2102_p6)
}
 0x334   : > { %1845 = dma.vmem_to_hbm [thread:$0]  (%p3322_p2), %s2997_s23, 256, %s2995_s3, %s1177_s16  }
 0x335 PF: > { %s3323_s9 = sld [smem:[#allocation13_spill]]  ;;  %s3324_s29 = sld [smem:[#allocation14_spill]] }
 0x336   : > { %p1862_p10 = scmp.ge.s32.totalorder %s2204_s19, 2 }
 0x33b   : > { %s1203_s5 = sand.u32 1, %s3323_s9   ;;  %p3325_p12 = scmp.ne.s32.totalorder %s3324_s29, 0 }
 0x33c   : > { %s1204_s15 = scalar_lea.sflag [#allocation6], %s1203_s5 }
 0x33d   : > { %p1856_p0 = pnand %p1862_p10, %p3325_p12 }
 0x33f   : > { %2159 = dma.done.wait (!%p1856_p0), %s1204_s15, 256  }
 0x340   : > { %2161 = vsyncadd (!%p1856_p0), %s1204_s15, 4294967040  ;;  %s19_s19 = sadd.s32 1, %s2204_s19   ;;  %s3326_s27 = sld [smem:[#allocation15_spill]] }
 0x341   : > { %p16_p8 = scmp.ge.s32.totalorder %s19_s19, 6   ;;  %s3327_s23 = sld [smem:[#allocation16_spill]] }
 0x342   : > { %s3328_s9 = smov %s2168_s10  ;;  %s3329_s10 = smov %s2172_s11 }
 0x343   : > { %s3330_s11 = smov %s2379_s8  ;;  %s3331_s12 = smov %s2180_s13 }
 0x344   : > { %s3332_s13 = smov %s2184_s14  ;;  %s3333_s14 = smov %s2384_s24 }
 0x345   : > { %s3334_s15 = smov %s2196_s17  ;;  %s3335_s16 = smov %s2200_s18 }
 0x346   : > { %s3336_s17 = smov %s3326_s27  ;;  %18 = sbr.rel (!%p16_p8) target bundleno = 12 (0xc), region = 82 }
 0x347   : > { %s3337_s18 = smov %s3327_s23 }
 0x34d   :  { %1209 = vsyncpa [#allocation5], 1 }
 0x34e   :  { %1211 = vsyncpa [#allocation5 + $0x1], 1 }
 0x34f   :  { %1212 = vsyncpa [#allocation8], 1 }
 0x350   :  { %1213 = vsyncpa [#allocation6], 1 }
 0x351   :  { %1215 = vsyncpa [#allocation6 + $0x1], 1 }

</bundles_post_ra>
